<compile_context>
chip_gen: v6e
topology: v6e:2x2x1
jax: 0.10.0
libtpu: 0.0.40
codegen_flags: <defaults>
</compile_context>

<pallas_src>
import math
import functools

import jax
import jax.numpy as jnp
from jax.experimental import pallas as pl
from jax.experimental.pallas import tpu as pltpu


# ---------------------------------------------------------------------------
# In-kernel helpers
# ---------------------------------------------------------------------------

def _layernorm(x, g, b, eps):
    # PyTorch nn.LayerNorm over the last dim (biased variance, eps inside rsqrt).
    mean = jnp.mean(x, axis=-1, keepdims=True)
    c = x - mean
    var = jnp.mean(c * c, axis=-1, keepdims=True)
    return c * jax.lax.rsqrt(var + eps) * g + b


# ---------------------------------------------------------------------------
# Fused forward kernel (one batch-block per grid step)
# ---------------------------------------------------------------------------

def _fused_forward_kernel(
    x_ref,                      # (nb*T, d_in)                 f32  activation block
    w_in_ref, b_in_ref,         # (d_in, H) bf16, (1, H) f32
    wm_ref,                     # (L, H, H)                    bf16 map_embed
    win_ref, bin_ref,           # (L, H, 3H) bf16, (L, 1, 3H) f32  packed QKV in-proj
    wo_ref,                     # (L, H, H)                    bf16 packed out-proj
    w1_ref, b1_ref,             # (L, H, FF) bf16, (L, 1, FF) f32
    w2_ref,                     # (L, FF, H)                   bf16
    bh_ref,                     # (L*7, 1, H) f32, per layer: [bm, bo, b2, g1, be1, g2, be2]
    wo1_ref, bo1_ref,           # (H, H) bf16, (1, H) f32
    wo2_ref, bo2_ref,           # (H, P_pad) bf16, (1, P_pad) f32
    out_ref,                    # (nb*T, P_pad)                f32
    attn_scratch,               # VMEM (nb*T, H)               f32  head re-assembly buffer
    *, num_layers, nheads, head_dim, n_batch_blk, t_seq, eps,
):
    f32 = jnp.float32
    bf16 = jnp.bfloat16
    nb, T, hd = n_batch_blk, t_seq, head_dim
    NT = nb * T
    H = nheads * head_dim
    scale = 1.0 / math.sqrt(head_dim)

    # ---- input mapping (bf16 operands, f32 accumulate) ----------------------
    x = jnp.dot(x_ref[...].astype(bf16), w_in_ref[...],
                preferred_element_type=f32) + b_in_ref[...]

    # ---- strictly-causal score bias, kept (T, T) -----------------------------
    row = jax.lax.broadcasted_iota(jnp.int32, (T, T), 0)
    col = jax.lax.broadcasted_iota(jnp.int32, (T, T), 1)
    mask_bias = jnp.where(col > row, -1e30, 0.0).astype(f32)

    # ---- encoder layers (statically unrolled; L is small) --------------------
    for l in range(num_layers):
        bm, bo, b2 = bh_ref[l * 7 + 0], bh_ref[l * 7 + 1], bh_ref[l * 7 + 2]
        g1, be1 = bh_ref[l * 7 + 3], bh_ref[l * 7 + 4]
        g2, be2 = bh_ref[l * 7 + 5], bh_ref[l * 7 + 6]

        # map_embed
        m = jnp.dot(x.astype(bf16), wm_ref[l], preferred_element_type=f32) + bm

        # packed lane-dense QKV in-projection: ONE (H, 3H) matmul
        qkv = (jnp.dot(m.astype(bf16), win_ref[l], preferred_element_type=f32)
               + bin_ref[l])

        # attention core: per-head slices of the packed result, batched over nb.
        # TODO(synk): flash-style KV loop for large T (see header note).
        for h in range(nheads):
            q_h = qkv[:, h * hd:(h + 1) * hd].reshape(nb, T, hd)
            k_h = qkv[:, H + h * hd:H + (h + 1) * hd].reshape(nb, T, hd)
            v_h = qkv[:, 2 * H + h * hd:2 * H + (h + 1) * hd].reshape(nb, T, hd)

            s = jnp.einsum("bqd,bkd->bqk", q_h.astype(bf16), k_h.astype(bf16),
                           preferred_element_type=f32) * scale
            s = s + mask_bias[None, :, :]                       # broadcast, no copy
            s = s - jnp.max(s, axis=-1, keepdims=True)
            p = jnp.exp(s)
            p = p * pl.reciprocal(jnp.sum(p, axis=-1, keepdims=True), approx=True)
            o_h = jnp.einsum("bqk,bkd->bqd", p.astype(bf16), v_h.astype(bf16),
                             preferred_element_type=f32)
            # lane-contiguous head assembly (PyTorch MHA concat order)
            attn_scratch[:, h * hd:(h + 1) * hd] = o_h.reshape(NT, hd)

        # packed full-depth out-projection: ONE (NT,H)@(H,H) matmul
        attn_out = jnp.dot(attn_scratch[...].astype(bf16), wo_ref[l],
                           preferred_element_type=f32) + bo

        # residual1 uses the ORIGINAL layer input x (not map_embed(x)) -- matches
        # the PyTorch module: src = norm1(src + self_attn(map_embed(src), ...)).
        src = _layernorm(x + attn_out, g1, be1, eps)

        # pointwise feed-forward
        ff = jnp.dot(src.astype(bf16), w1_ref[l], preferred_element_type=f32) + b1_ref[l]
        ff = jnp.maximum(ff, 0.0)
        ff = jnp.dot(ff.astype(bf16), w2_ref[l], preferred_element_type=f32) + b2

        x = _layernorm(src + ff, g2, be2, eps)

    # ---- output_mapping: Linear -> ReLU -> Linear (padded to 128 lanes) -------
    y = jnp.dot(x.astype(bf16), wo1_ref[...], preferred_element_type=f32) + bo1_ref[...]
    y = jnp.maximum(y, 0.0)
    out_ref[...] = (jnp.dot(y.astype(bf16), wo2_ref[...],
                            preferred_element_type=f32) + bo2_ref[...])


# ---------------------------------------------------------------------------
# Wrapper: positional encoding, weight packing, single pallas_call
# ---------------------------------------------------------------------------

def positional_encoding(times, dim_pos_embed, max_pos_encoding, min_timescale=1.0):
    """times: (N, t_cond) -> (N, t_cond, dim_pos_embed)."""
    num_ts = dim_pos_embed // 2
    log_inc = math.log(float(max_pos_encoding) / float(min_timescale)) / (num_ts - 1)
    inv = min_timescale * jnp.exp(jnp.arange(num_ts, dtype=jnp.float32) * -log_inc)
    scaled = times[..., None] * inv[None, :]
    return jnp.concatenate([jnp.sin(scaled), jnp.cos(scaled)], axis=-1)


def _const_index_map(ndim):
    def im(i):
        return (0,) * ndim
    return im


def _choose_batch_block(N, T, row_budget=512):
    """Largest divisor nb of N such that nb*T rows fit the budget and stay
    sublane-aligned ((nb*T) % 8 == 0, or nb == N so the block equals the array)."""
    best = None
    for nb in range(1, N + 1):
        if N % nb:
            continue
        if (nb * T) % 8 != 0 and nb != N:
            continue
        if nb * T <= row_budget:
            best = nb
    return best if best is not None else N


def treatformer_forward(B, X, M, T, times, params, batch_block=None):
    """Returns x_pred of shape (N, t_cond, prediction_size)."""
    N, t_cond, _ = X.shape
    nheads = params["nheads"]
    layers = params["layers"]
    L = len(layers)
    H = params["input_map_w"].shape[1]
    assert H % nheads == 0
    hd = H // nheads
    FF = layers[0]["w1"].shape[1]
    P = params["output_map2_w"].shape[1]
    P_pad = ((P + 127) // 128) * 128          # lane-dense output store

    f32, bf16 = jnp.float32, jnp.bfloat16

    # ---- JAX glue: get_long_input_x + positional encoding + baseline concat ----
    pos = positional_encoding(times, params["dim_pos_embed"], params["max_pos_encoding"])
    b_rep = jnp.broadcast_to(B[:, None, :], (N, t_cond, B.shape[-1]))
    x_full = jnp.concatenate([pos, X, M, T, b_rep], axis=-1).astype(f32)
    d_in = x_full.shape[-1]
    x2d = x_full.reshape(N * t_cond, d_in)

    # ---- pack per-layer weights: bf16 matmul operands, f32 biases / LN params ----
    wm_s = jnp.stack([lp["wm"] for lp in layers]).astype(bf16)              # (L,H,H)
    win_s = jnp.stack([lp["win"] for lp in layers]).astype(bf16)            # (L,H,3H)
    bin_s = jnp.stack([lp["bin"].reshape(1, 3 * H) for lp in layers]).astype(f32)
    wo_s = jnp.stack([lp["wo"] for lp in layers]).astype(bf16)              # (L,H,H)
    w1_s = jnp.stack([lp["w1"] for lp in layers]).astype(bf16)              # (L,H,FF)
    b1_s = jnp.stack([lp["b1"].reshape(1, FF) for lp in layers]).astype(f32)
    w2_s = jnp.stack([lp["w2"] for lp in layers]).astype(bf16)              # (L,FF,H)

    bh_rows = []
    for lp in layers:
        for name in ("bm", "bo", "b2", "g1", "be1", "g2", "be2"):
            bh_rows.append(lp[name].reshape(1, H))
    bh_s = jnp.stack(bh_rows).astype(f32)                                   # (L*7,1,H)

    wo2_pad = jnp.zeros((H, P_pad), f32).at[:, :P].set(params["output_map2_w"]).astype(bf16)
    bo2_pad = jnp.zeros((1, P_pad), f32).at[:, :P].set(params["output_map2_b"].reshape(1, P))

    args = (
        x2d,
        params["input_map_w"].astype(bf16),
        params["input_map_b"].reshape(1, H).astype(f32),
        wm_s, win_s, bin_s, wo_s, w1_s, b1_s, w2_s, bh_s,
        params["output_map1_w"].astype(bf16),
        params["output_map1_b"].reshape(1, H).astype(f32),
        wo2_pad, bo2_pad,
    )

    # ---- grid over batch blocks; weights resident across steps ----
    nb = batch_block if batch_block is not None else _choose_batch_block(N, t_cond)
    assert N % nb == 0
    rows = nb * t_cond
    grid = (N // nb,)

    in_specs = [pl.BlockSpec((rows, d_in), lambda i: (i, 0))]
    in_specs += [pl.BlockSpec(a.shape, _const_index_map(a.ndim)) for a in args[1:]]
    out_specs = pl.BlockSpec((rows, P_pad), lambda i: (i, 0))

    # explicit VMEM budget: resident weights (x2) + generous activation headroom
    weight_bytes = sum(int(a.size) * a.dtype.itemsize for a in args[1:])
    act_bytes = rows * max(d_in, 3 * H, FF, H, P_pad) * 4
    vmem_limit = int(2 * weight_bytes + 48 * act_bytes + (4 << 20))
    vmem_limit = max(16 << 20, min(vmem_limit, 64 << 20))

    out2d = pl.pallas_call(
        functools.partial(
            _fused_forward_kernel,
            num_layers=L, nheads=nheads, head_dim=hd,
            n_batch_blk=nb, t_seq=t_cond, eps=1e-5,
        ),
        out_shape=jax.ShapeDtypeStruct((N * t_cond, P_pad), f32),
        grid_spec=pltpu.PrefetchScalarGridSpec(
            num_scalar_prefetch=0,
            grid=grid,
            in_specs=in_specs,
            out_specs=out_specs,
            scratch_shapes=[pltpu.VMEM((rows, H), f32)],
        ),
        compiler_params=pltpu.CompilerParams(
            dimension_semantics=("parallel",),        # v7x: shard batch blocks over 2 TCs
            vmem_limit_bytes=vmem_limit,
        ),
    )(*args)

    return out2d[:, :P].reshape(N, t_cond, P)


# ---------------------------------------------------------------------------
# Main
# ---------------------------------------------------------------------------

if __name__ == "__main__":
    # small shapes consistent with the module
    N, t_cond = 2, 8
    input_long_size = 4
    baseline_size = 5
    treatment_size = 3
    hidden_dim = 32
    prediction_size = 6
    num_layers = 2
    nheads = 4
    ff_dim = 64
    max_pos_encoding = 100
    dim_pos_embed = 10
    # treatment_heads == False -> d_in = 2*input + pos + baseline + treatment
    d_in = 2 * input_long_size + dim_pos_embed + baseline_size + treatment_size

    key = jax.random.PRNGKey(0)
    keys = iter(jax.random.split(key, 64))

    def rnd(shape, scale=0.1):
        return (scale * jax.random.normal(next(keys), shape)).astype(jnp.float32)

    # inputs
    B = rnd((N, baseline_size), 1.0)
    X = rnd((N, t_cond, input_long_size), 1.0)
    M = (jax.random.uniform(next(keys), (N, t_cond, input_long_size)) > 0.5).astype(
        jnp.float32
    )
    Ttreat = rnd((N, t_cond, treatment_size), 1.0)
    times = jnp.broadcast_to(
        jnp.arange(t_cond, dtype=jnp.float32)[None, :], (N, t_cond)
    )

    # parameters (deterministic, (in, out) layout: y = x @ W + b)
    layer_params = []
    for _ in range(num_layers):
        layer_params.append(dict(
            wm=rnd((hidden_dim, hidden_dim)), bm=rnd((hidden_dim,)),
            win=rnd((hidden_dim, 3 * hidden_dim)), bin=rnd((3 * hidden_dim,)),
            wo=rnd((hidden_dim, hidden_dim)), bo=rnd((hidden_dim,)),
            w1=rnd((hidden_dim, ff_dim)), b1=rnd((ff_dim,)),
            w2=rnd((ff_dim, hidden_dim)), b2=rnd((hidden_dim,)),
            g1=jnp.ones((hidden_dim,), jnp.float32),
            be1=jnp.zeros((hidden_dim,), jnp.float32),
            g2=jnp.ones((hidden_dim,), jnp.float32),
            be2=jnp.zeros((hidden_dim,), jnp.float32),
        ))

    params = dict(
        input_map_w=rnd((d_in, hidden_dim)),
        input_map_b=rnd((hidden_dim,)),
        output_map1_w=rnd((hidden_dim, hidden_dim)),
        output_map1_b=rnd((hidden_dim,)),
        output_map2_w=rnd((hidden_dim, prediction_size)),
        output_map2_b=rnd((prediction_size,)),
        layers=layer_params,
        nheads=nheads,
        dim_pos_embed=dim_pos_embed,
        max_pos_encoding=max_pos_encoding,
    )

    # batch_block=1 -> grid=(2,) exercises the pipelined / parallel batch-block axis
    x_pred = treatformer_forward(B, X, M, Ttreat, times, params, batch_block=1)
    jax.block_until_ready(x_pred)
    assert x_pred.shape == (N, t_cond, prediction_size)
    print("KERNEL_OK")
</pallas_src>

<mosaic_0001>
module attributes {stable_mosaic.version = 11 : i64} {
  func.func @_fused_forward_kernel(%arg0: i32, %arg1: memref<8x26xf32, #tpu.memory_space<vmem>>, %arg2: memref<26x32xbf16, #tpu.memory_space<vmem>>, %arg3: memref<1x32xf32, #tpu.memory_space<vmem>>, %arg4: memref<2x32x32xbf16, #tpu.memory_space<vmem>>, %arg5: memref<2x32x96xbf16, #tpu.memory_space<vmem>>, %arg6: memref<2x1x96xf32, #tpu.memory_space<vmem>>, %arg7: memref<2x32x32xbf16, #tpu.memory_space<vmem>>, %arg8: memref<2x32x64xbf16, #tpu.memory_space<vmem>>, %arg9: memref<2x1x64xf32, #tpu.memory_space<vmem>>, %arg10: memref<2x64x32xbf16, #tpu.memory_space<vmem>>, %arg11: memref<14x1x32xf32, #tpu.memory_space<vmem>>, %arg12: memref<32x32xbf16, #tpu.memory_space<vmem>>, %arg13: memref<1x32xf32, #tpu.memory_space<vmem>>, %arg14: memref<32x128xbf16, #tpu.memory_space<vmem>>, %arg15: memref<1x128xf32, #tpu.memory_space<vmem>>, %arg16: memref<8x128xf32, #tpu.memory_space<vmem>>, %arg17: memref<8x32xf32, #tpu.memory_space<vmem>>) attributes {dimension_semantics = [#tpu.dimension_semantics<parallel>], iteration_bounds = array<i64: 2>, scalar_prefetch = 0 : i64, scratch_operands = 1 : i64, tpu.core_type = #tpu.core_type<tc>, window_params = [{transform_indices = @transform_0, window_bounds = array<i64: 8, 26>}, {pipeline_mode = #tpu.pipeline_mode<synchronous>, transform_indices = @transform_1, window_bounds = array<i64: 26, 32>}, {pipeline_mode = #tpu.pipeline_mode<synchronous>, transform_indices = @transform_2, window_bounds = array<i64: 1, 32>}, {pipeline_mode = #tpu.pipeline_mode<synchronous>, transform_indices = @transform_3, window_bounds = array<i64: 2, 32, 32>}, {pipeline_mode = #tpu.pipeline_mode<synchronous>, transform_indices = @transform_4, window_bounds = array<i64: 2, 32, 96>}, {pipeline_mode = #tpu.pipeline_mode<synchronous>, transform_indices = @transform_5, window_bounds = array<i64: 2, 1, 96>}, {pipeline_mode = #tpu.pipeline_mode<synchronous>, transform_indices = @transform_6, window_bounds = array<i64: 2, 32, 32>}, {pipeline_mode = #tpu.pipeline_mode<synchronous>, transform_indices = @transform_7, window_bounds = array<i64: 2, 32, 64>}, {pipeline_mode = #tpu.pipeline_mode<synchronous>, transform_indices = @transform_8, window_bounds = array<i64: 2, 1, 64>}, {pipeline_mode = #tpu.pipeline_mode<synchronous>, transform_indices = @transform_9, window_bounds = array<i64: 2, 64, 32>}, {pipeline_mode = #tpu.pipeline_mode<synchronous>, transform_indices = @transform_10, window_bounds = array<i64: 14, 1, 32>}, {pipeline_mode = #tpu.pipeline_mode<synchronous>, transform_indices = @transform_11, window_bounds = array<i64: 32, 32>}, {pipeline_mode = #tpu.pipeline_mode<synchronous>, transform_indices = @transform_12, window_bounds = array<i64: 1, 32>}, {pipeline_mode = #tpu.pipeline_mode<synchronous>, transform_indices = @transform_13, window_bounds = array<i64: 32, 128>}, {pipeline_mode = #tpu.pipeline_mode<synchronous>, transform_indices = @transform_14, window_bounds = array<i64: 1, 128>}, {transform_indices = @transform_15, window_bounds = array<i64: 8, 128>}]} {
    %c0 = arith.constant 0 : index
    %c0_0 = arith.constant 0 : index
    %0 = vector.load %arg1[%c0, %c0_0] : memref<8x26xf32, #tpu.memory_space<vmem>>, vector<8x26xf32>
    %1 = arith.truncf %0 : vector<8x26xf32> to vector<8x26xbf16>
    %c0_1 = arith.constant 0 : index
    %c0_2 = arith.constant 0 : index
    %2 = vector.load %arg2[%c0_1, %c0_2] : memref<26x32xbf16, #tpu.memory_space<vmem>>, vector<26x32xbf16>
    %cst = arith.constant dense<0.000000e+00> : vector<8x32xf32>
    %3 = tpu.matmul %1, %2, %cst {dimension_numbers = #tpu.dot_dimension_numbers<[1], [0], [0], [1], [0, 0, 1, 1], [], []>} : vector<8x26xbf16>, vector<26x32xbf16>, vector<8x32xf32> -> vector<8x32xf32>
    %c0_3 = arith.constant 0 : index
    %c0_4 = arith.constant 0 : index
    %4 = vector.load %arg3[%c0_3, %c0_4] : memref<1x32xf32, #tpu.memory_space<vmem>>, vector<1x32xf32>
    %5 = vector.broadcast %4 : vector<1x32xf32> to vector<8x32xf32>
    %6 = arith.addf %3, %5 : vector<8x32xf32>
    %7 = tpu.iota {dimensions = array<i32: 0>} : vector<8x8xi32>
    %8 = tpu.iota {dimensions = array<i32: 1>} : vector<8x8xi32>
    %9 = arith.cmpi sgt, %8, %7 : vector<8x8xi32>
    %cst_5 = arith.constant -1.000000e+30 : f32
    %cst_6 = arith.constant 0.000000e+00 : f32
    %10 = vector.broadcast %cst_5 : f32 to vector<8x8xf32>
    %11 = vector.broadcast %cst_6 : f32 to vector<8x8xf32>
    %12 = arith.select %9, %10, %11 : vector<8x8xi1>, vector<8x8xf32>
    %c0_7 = arith.constant 0 : index
    %c0_8 = arith.constant 0 : index
    %c0_9 = arith.constant 0 : index
    %13 = vector.load %arg11[%c0_7, %c0_8, %c0_9] : memref<14x1x32xf32, #tpu.memory_space<vmem>>, vector<1x1x32xf32>
    %14 = vector.shape_cast %13 : vector<1x1x32xf32> to vector<1x32xf32>
    %c1 = arith.constant 1 : index
    %c0_10 = arith.constant 0 : index
    %c0_11 = arith.constant 0 : index
    %15 = vector.load %arg11[%c1, %c0_10, %c0_11] : memref<14x1x32xf32, #tpu.memory_space<vmem>>, vector<1x1x32xf32>
    %16 = vector.shape_cast %15 : vector<1x1x32xf32> to vector<1x32xf32>
    %c2 = arith.constant 2 : index
    %c0_12 = arith.constant 0 : index
    %c0_13 = arith.constant 0 : index
    %17 = vector.load %arg11[%c2, %c0_12, %c0_13] : memref<14x1x32xf32, #tpu.memory_space<vmem>>, vector<1x1x32xf32>
    %18 = vector.shape_cast %17 : vector<1x1x32xf32> to vector<1x32xf32>
    %c3 = arith.constant 3 : index
    %c0_14 = arith.constant 0 : index
    %c0_15 = arith.constant 0 : index
    %19 = vector.load %arg11[%c3, %c0_14, %c0_15] : memref<14x1x32xf32, #tpu.memory_space<vmem>>, vector<1x1x32xf32>
    %20 = vector.shape_cast %19 : vector<1x1x32xf32> to vector<1x32xf32>
    %c4 = arith.constant 4 : index
    %c0_16 = arith.constant 0 : index
    %c0_17 = arith.constant 0 : index
    %21 = vector.load %arg11[%c4, %c0_16, %c0_17] : memref<14x1x32xf32, #tpu.memory_space<vmem>>, vector<1x1x32xf32>
    %22 = vector.shape_cast %21 : vector<1x1x32xf32> to vector<1x32xf32>
    %c5 = arith.constant 5 : index
    %c0_18 = arith.constant 0 : index
    %c0_19 = arith.constant 0 : index
    %23 = vector.load %arg11[%c5, %c0_18, %c0_19] : memref<14x1x32xf32, #tpu.memory_space<vmem>>, vector<1x1x32xf32>
    %24 = vector.shape_cast %23 : vector<1x1x32xf32> to vector<1x32xf32>
    %c6 = arith.constant 6 : index
    %c0_20 = arith.constant 0 : index
    %c0_21 = arith.constant 0 : index
    %25 = vector.load %arg11[%c6, %c0_20, %c0_21] : memref<14x1x32xf32, #tpu.memory_space<vmem>>, vector<1x1x32xf32>
    %26 = vector.shape_cast %25 : vector<1x1x32xf32> to vector<1x32xf32>
    %27 = arith.truncf %6 : vector<8x32xf32> to vector<8x32xbf16>
    %c0_22 = arith.constant 0 : index
    %c0_23 = arith.constant 0 : index
    %c0_24 = arith.constant 0 : index
    %28 = vector.load %arg4[%c0_22, %c0_23, %c0_24] : memref<2x32x32xbf16, #tpu.memory_space<vmem>>, vector<1x32x32xbf16>
    %29 = vector.shape_cast %28 : vector<1x32x32xbf16> to vector<32x32xbf16>
    %cst_25 = arith.constant dense<0.000000e+00> : vector<8x32xf32>
    %30 = tpu.matmul %27, %29, %cst_25 {dimension_numbers = #tpu.dot_dimension_numbers<[1], [0], [0], [1], [0, 0, 1, 1], [], []>} : vector<8x32xbf16>, vector<32x32xbf16>, vector<8x32xf32> -> vector<8x32xf32>
    %31 = vector.broadcast %14 : vector<1x32xf32> to vector<8x32xf32>
    %32 = arith.addf %30, %31 : vector<8x32xf32>
    %33 = arith.truncf %32 : vector<8x32xf32> to vector<8x32xbf16>
    %c0_26 = arith.constant 0 : index
    %c0_27 = arith.constant 0 : index
    %c0_28 = arith.constant 0 : index
    %34 = vector.load %arg5[%c0_26, %c0_27, %c0_28] : memref<2x32x96xbf16, #tpu.memory_space<vmem>>, vector<1x32x96xbf16>
    %35 = vector.shape_cast %34 : vector<1x32x96xbf16> to vector<32x96xbf16>
    %cst_29 = arith.constant dense<0.000000e+00> : vector<8x96xf32>
    %36 = tpu.matmul %33, %35, %cst_29 {dimension_numbers = #tpu.dot_dimension_numbers<[1], [0], [0], [1], [0, 0, 1, 1], [], []>} : vector<8x32xbf16>, vector<32x96xbf16>, vector<8x96xf32> -> vector<8x96xf32>
    %c0_30 = arith.constant 0 : index
    %c0_31 = arith.constant 0 : index
    %c0_32 = arith.constant 0 : index
    %37 = vector.load %arg6[%c0_30, %c0_31, %c0_32] : memref<2x1x96xf32, #tpu.memory_space<vmem>>, vector<1x1x96xf32>
    %38 = vector.shape_cast %37 : vector<1x1x96xf32> to vector<1x96xf32>
    %39 = vector.broadcast %38 : vector<1x96xf32> to vector<8x96xf32>
    %40 = arith.addf %36, %39 : vector<8x96xf32>
    %41 = vector.extract_strided_slice %40 {offsets = [0, 0], sizes = [8, 8], strides = [1, 1]} : vector<8x96xf32> to vector<8x8xf32>
    %42 = vector.shape_cast %41 : vector<8x8xf32> to vector<1x8x8xf32>
    %43 = vector.extract_strided_slice %40 {offsets = [0, 32], sizes = [8, 8], strides = [1, 1]} : vector<8x96xf32> to vector<8x8xf32>
    %44 = vector.shape_cast %43 : vector<8x8xf32> to vector<1x8x8xf32>
    %45 = vector.extract_strided_slice %40 {offsets = [0, 64], sizes = [8, 8], strides = [1, 1]} : vector<8x96xf32> to vector<8x8xf32>
    %46 = vector.shape_cast %45 : vector<8x8xf32> to vector<1x8x8xf32>
    %47 = arith.truncf %42 : vector<1x8x8xf32> to vector<1x8x8xbf16>
    %48 = arith.truncf %44 : vector<1x8x8xf32> to vector<1x8x8xbf16>
    "tpu.trace_start"() <{level = 10 : i32, message = "bqd,bkd->bqk"}> : () -> ()
    %cst_33 = arith.constant dense<0.000000e+00> : vector<1x8x8xf32>
    %49 = tpu.matmul %47, %48, %cst_33 {dimension_numbers = #tpu.dot_dimension_numbers<[2], [2], [1], [1], [0, 0, 0, 1, 1, 1], [0], [0]>} : vector<1x8x8xbf16>, vector<1x8x8xbf16>, vector<1x8x8xf32> -> vector<1x8x8xf32>
    "tpu.trace_stop"() : () -> ()
    %cst_34 = arith.constant 0.353553385 : f32
    %50 = vector.broadcast %cst_34 : f32 to vector<1x8x8xf32>
    %51 = arith.mulf %49, %50 : vector<1x8x8xf32>
    %52 = vector.shape_cast %12 : vector<8x8xf32> to vector<1x8x8xf32>
    %53 = arith.addf %51, %52 : vector<1x8x8xf32>
    %cst_35 = arith.constant dense<0xFF800000> : vector<1x8xf32>
    %54 = vector.multi_reduction <maximumf>, %53, %cst_35 [2] : vector<1x8x8xf32> to vector<1x8xf32>
    %55 = vector.shape_cast %54 : vector<1x8xf32> to vector<1x8x1xf32>
    %56 = vector.broadcast %55 : vector<1x8x1xf32> to vector<1x8x8xf32>
    %57 = arith.subf %53, %56 : vector<1x8x8xf32>
    %58 = math.exp %57 : vector<1x8x8xf32>
    %cst_36 = arith.constant dense<0.000000e+00> : vector<1x8xf32>
    %59 = vector.multi_reduction <add>, %58, %cst_36 [2] : vector<1x8x8xf32> to vector<1x8xf32>
    %60 = vector.shape_cast %59 : vector<1x8xf32> to vector<1x8x1xf32>
    %61 = tpu.reciprocal %60 {approx = true} : vector<1x8x1xf32> -> vector<1x8x1xf32>
    %62 = vector.broadcast %61 : vector<1x8x1xf32> to vector<1x8x8xf32>
    %63 = arith.mulf %58, %62 : vector<1x8x8xf32>
    %64 = arith.truncf %63 : vector<1x8x8xf32> to vector<1x8x8xbf16>
    %65 = arith.truncf %46 : vector<1x8x8xf32> to vector<1x8x8xbf16>
    "tpu.trace_start"() <{level = 10 : i32, message = "bqk,bkd->bqd"}> : () -> ()
    %cst_37 = arith.constant dense<0.000000e+00> : vector<1x8x8xf32>
    %66 = tpu.matmul %64, %65, %cst_37 {dimension_numbers = #tpu.dot_dimension_numbers<[2], [1], [1], [2], [0, 0, 0, 1, 1, 2], [0], [0]>} : vector<1x8x8xbf16>, vector<1x8x8xbf16>, vector<1x8x8xf32> -> vector<1x8x8xf32>
    "tpu.trace_stop"() : () -> ()
    %67 = vector.shape_cast %66 : vector<1x8x8xf32> to vector<8x8xf32>
    %c0_38 = arith.constant 0 : index
    %c0_39 = arith.constant 0 : index
    %68 = vector.load %arg17[%c0_38, %c0_39] : memref<8x32xf32, #tpu.memory_space<vmem>>, vector<8x8xf32>
    tpu.vector_store %arg17[%c0_38, %c0_39], %67 {strides = array<i32>} : memref<8x32xf32, #tpu.memory_space<vmem>>, vector<8x8xf32>,
    %69 = vector.extract_strided_slice %40 {offsets = [0, 8], sizes = [8, 8], strides = [1, 1]} : vector<8x96xf32> to vector<8x8xf32>
    %70 = vector.shape_cast %69 : vector<8x8xf32> to vector<1x8x8xf32>
    %71 = vector.extract_strided_slice %40 {offsets = [0, 40], sizes = [8, 8], strides = [1, 1]} : vector<8x96xf32> to vector<8x8xf32>
    %72 = vector.shape_cast %71 : vector<8x8xf32> to vector<1x8x8xf32>
    %73 = vector.extract_strided_slice %40 {offsets = [0, 72], sizes = [8, 8], strides = [1, 1]} : vector<8x96xf32> to vector<8x8xf32>
    %74 = vector.shape_cast %73 : vector<8x8xf32> to vector<1x8x8xf32>
    %75 = arith.truncf %70 : vector<1x8x8xf32> to vector<1x8x8xbf16>
    %76 = arith.truncf %72 : vector<1x8x8xf32> to vector<1x8x8xbf16>
    "tpu.trace_start"() <{level = 10 : i32, message = "bqd,bkd->bqk"}> : () -> ()
    %cst_40 = arith.constant dense<0.000000e+00> : vector<1x8x8xf32>
    %77 = tpu.matmul %75, %76, %cst_40 {dimension_numbers = #tpu.dot_dimension_numbers<[2], [2], [1], [1], [0, 0, 0, 1, 1, 1], [0], [0]>} : vector<1x8x8xbf16>, vector<1x8x8xbf16>, vector<1x8x8xf32> -> vector<1x8x8xf32>
    "tpu.trace_stop"() : () -> ()
    %cst_41 = arith.constant 0.353553385 : f32
    %78 = vector.broadcast %cst_41 : f32 to vector<1x8x8xf32>
    %79 = arith.mulf %77, %78 : vector<1x8x8xf32>
    %80 = vector.shape_cast %12 : vector<8x8xf32> to vector<1x8x8xf32>
    %81 = arith.addf %79, %80 : vector<1x8x8xf32>
    %cst_42 = arith.constant dense<0xFF800000> : vector<1x8xf32>
    %82 = vector.multi_reduction <maximumf>, %81, %cst_42 [2] : vector<1x8x8xf32> to vector<1x8xf32>
    %83 = vector.shape_cast %82 : vector<1x8xf32> to vector<1x8x1xf32>
    %84 = vector.broadcast %83 : vector<1x8x1xf32> to vector<1x8x8xf32>
    %85 = arith.subf %81, %84 : vector<1x8x8xf32>
    %86 = math.exp %85 : vector<1x8x8xf32>
    %cst_43 = arith.constant dense<0.000000e+00> : vector<1x8xf32>
    %87 = vector.multi_reduction <add>, %86, %cst_43 [2] : vector<1x8x8xf32> to vector<1x8xf32>
    %88 = vector.shape_cast %87 : vector<1x8xf32> to vector<1x8x1xf32>
    %89 = tpu.reciprocal %88 {approx = true} : vector<1x8x1xf32> -> vector<1x8x1xf32>
    %90 = vector.broadcast %89 : vector<1x8x1xf32> to vector<1x8x8xf32>
    %91 = arith.mulf %86, %90 : vector<1x8x8xf32>
    %92 = arith.truncf %91 : vector<1x8x8xf32> to vector<1x8x8xbf16>
    %93 = arith.truncf %74 : vector<1x8x8xf32> to vector<1x8x8xbf16>
    "tpu.trace_start"() <{level = 10 : i32, message = "bqk,bkd->bqd"}> : () -> ()
    %cst_44 = arith.constant dense<0.000000e+00> : vector<1x8x8xf32>
    %94 = tpu.matmul %92, %93, %cst_44 {dimension_numbers = #tpu.dot_dimension_numbers<[2], [1], [1], [2], [0, 0, 0, 1, 1, 2], [0], [0]>} : vector<1x8x8xbf16>, vector<1x8x8xbf16>, vector<1x8x8xf32> -> vector<1x8x8xf32>
    "tpu.trace_stop"() : () -> ()
    %95 = vector.shape_cast %94 : vector<1x8x8xf32> to vector<8x8xf32>
    %c0_45 = arith.constant 0 : index
    %c8 = arith.constant 8 : index
    %96 = vector.load %arg17[%c0_45, %c8] : memref<8x32xf32, #tpu.memory_space<vmem>>, vector<8x8xf32>
    tpu.vector_store %arg17[%c0_45, %c8], %95 {strides = array<i32>} : memref<8x32xf32, #tpu.memory_space<vmem>>, vector<8x8xf32>,
    %97 = vector.extract_strided_slice %40 {offsets = [0, 16], sizes = [8, 8], strides = [1, 1]} : vector<8x96xf32> to vector<8x8xf32>
    %98 = vector.shape_cast %97 : vector<8x8xf32> to vector<1x8x8xf32>
    %99 = vector.extract_strided_slice %40 {offsets = [0, 48], sizes = [8, 8], strides = [1, 1]} : vector<8x96xf32> to vector<8x8xf32>
    %100 = vector.shape_cast %99 : vector<8x8xf32> to vector<1x8x8xf32>
    %101 = vector.extract_strided_slice %40 {offsets = [0, 80], sizes = [8, 8], strides = [1, 1]} : vector<8x96xf32> to vector<8x8xf32>
    %102 = vector.shape_cast %101 : vector<8x8xf32> to vector<1x8x8xf32>
    %103 = arith.truncf %98 : vector<1x8x8xf32> to vector<1x8x8xbf16>
    %104 = arith.truncf %100 : vector<1x8x8xf32> to vector<1x8x8xbf16>
    "tpu.trace_start"() <{level = 10 : i32, message = "bqd,bkd->bqk"}> : () -> ()
    %cst_46 = arith.constant dense<0.000000e+00> : vector<1x8x8xf32>
    %105 = tpu.matmul %103, %104, %cst_46 {dimension_numbers = #tpu.dot_dimension_numbers<[2], [2], [1], [1], [0, 0, 0, 1, 1, 1], [0], [0]>} : vector<1x8x8xbf16>, vector<1x8x8xbf16>, vector<1x8x8xf32> -> vector<1x8x8xf32>
    "tpu.trace_stop"() : () -> ()
    %cst_47 = arith.constant 0.353553385 : f32
    %106 = vector.broadcast %cst_47 : f32 to vector<1x8x8xf32>
    %107 = arith.mulf %105, %106 : vector<1x8x8xf32>
    %108 = vector.shape_cast %12 : vector<8x8xf32> to vector<1x8x8xf32>
    %109 = arith.addf %107, %108 : vector<1x8x8xf32>
    %cst_48 = arith.constant dense<0xFF800000> : vector<1x8xf32>
    %110 = vector.multi_reduction <maximumf>, %109, %cst_48 [2] : vector<1x8x8xf32> to vector<1x8xf32>
    %111 = vector.shape_cast %110 : vector<1x8xf32> to vector<1x8x1xf32>
    %112 = vector.broadcast %111 : vector<1x8x1xf32> to vector<1x8x8xf32>
    %113 = arith.subf %109, %112 : vector<1x8x8xf32>
    %114 = math.exp %113 : vector<1x8x8xf32>
    %cst_49 = arith.constant dense<0.000000e+00> : vector<1x8xf32>
    %115 = vector.multi_reduction <add>, %114, %cst_49 [2] : vector<1x8x8xf32> to vector<1x8xf32>
    %116 = vector.shape_cast %115 : vector<1x8xf32> to vector<1x8x1xf32>
    %117 = tpu.reciprocal %116 {approx = true} : vector<1x8x1xf32> -> vector<1x8x1xf32>
    %118 = vector.broadcast %117 : vector<1x8x1xf32> to vector<1x8x8xf32>
    %119 = arith.mulf %114, %118 : vector<1x8x8xf32>
    %120 = arith.truncf %119 : vector<1x8x8xf32> to vector<1x8x8xbf16>
    %121 = arith.truncf %102 : vector<1x8x8xf32> to vector<1x8x8xbf16>
    "tpu.trace_start"() <{level = 10 : i32, message = "bqk,bkd->bqd"}> : () -> ()
    %cst_50 = arith.constant dense<0.000000e+00> : vector<1x8x8xf32>
    %122 = tpu.matmul %120, %121, %cst_50 {dimension_numbers = #tpu.dot_dimension_numbers<[2], [1], [1], [2], [0, 0, 0, 1, 1, 2], [0], [0]>} : vector<1x8x8xbf16>, vector<1x8x8xbf16>, vector<1x8x8xf32> -> vector<1x8x8xf32>
    "tpu.trace_stop"() : () -> ()
    %123 = vector.shape_cast %122 : vector<1x8x8xf32> to vector<8x8xf32>
    %c0_51 = arith.constant 0 : index
    %c16 = arith.constant 16 : index
    %124 = vector.load %arg17[%c0_51, %c16] : memref<8x32xf32, #tpu.memory_space<vmem>>, vector<8x8xf32>
    tpu.vector_store %arg17[%c0_51, %c16], %123 {strides = array<i32>} : memref<8x32xf32, #tpu.memory_space<vmem>>, vector<8x8xf32>,
    %125 = vector.extract_strided_slice %40 {offsets = [0, 24], sizes = [8, 8], strides = [1, 1]} : vector<8x96xf32> to vector<8x8xf32>
    %126 = vector.shape_cast %125 : vector<8x8xf32> to vector<1x8x8xf32>
    %127 = vector.extract_strided_slice %40 {offsets = [0, 56], sizes = [8, 8], strides = [1, 1]} : vector<8x96xf32> to vector<8x8xf32>
    %128 = vector.shape_cast %127 : vector<8x8xf32> to vector<1x8x8xf32>
    %129 = vector.extract_strided_slice %40 {offsets = [0, 88], sizes = [8, 8], strides = [1, 1]} : vector<8x96xf32> to vector<8x8xf32>
    %130 = vector.shape_cast %129 : vector<8x8xf32> to vector<1x8x8xf32>
    %131 = arith.truncf %126 : vector<1x8x8xf32> to vector<1x8x8xbf16>
    %132 = arith.truncf %128 : vector<1x8x8xf32> to vector<1x8x8xbf16>
    "tpu.trace_start"() <{level = 10 : i32, message = "bqd,bkd->bqk"}> : () -> ()
    %cst_52 = arith.constant dense<0.000000e+00> : vector<1x8x8xf32>
    %133 = tpu.matmul %131, %132, %cst_52 {dimension_numbers = #tpu.dot_dimension_numbers<[2], [2], [1], [1], [0, 0, 0, 1, 1, 1], [0], [0]>} : vector<1x8x8xbf16>, vector<1x8x8xbf16>, vector<1x8x8xf32> -> vector<1x8x8xf32>
    "tpu.trace_stop"() : () -> ()
    %cst_53 = arith.constant 0.353553385 : f32
    %134 = vector.broadcast %cst_53 : f32 to vector<1x8x8xf32>
    %135 = arith.mulf %133, %134 : vector<1x8x8xf32>
    %136 = vector.shape_cast %12 : vector<8x8xf32> to vector<1x8x8xf32>
    %137 = arith.addf %135, %136 : vector<1x8x8xf32>
    %cst_54 = arith.constant dense<0xFF800000> : vector<1x8xf32>
    %138 = vector.multi_reduction <maximumf>, %137, %cst_54 [2] : vector<1x8x8xf32> to vector<1x8xf32>
    %139 = vector.shape_cast %138 : vector<1x8xf32> to vector<1x8x1xf32>
    %140 = vector.broadcast %139 : vector<1x8x1xf32> to vector<1x8x8xf32>
    %141 = arith.subf %137, %140 : vector<1x8x8xf32>
    %142 = math.exp %141 : vector<1x8x8xf32>
    %cst_55 = arith.constant dense<0.000000e+00> : vector<1x8xf32>
    %143 = vector.multi_reduction <add>, %142, %cst_55 [2] : vector<1x8x8xf32> to vector<1x8xf32>
    %144 = vector.shape_cast %143 : vector<1x8xf32> to vector<1x8x1xf32>
    %145 = tpu.reciprocal %144 {approx = true} : vector<1x8x1xf32> -> vector<1x8x1xf32>
    %146 = vector.broadcast %145 : vector<1x8x1xf32> to vector<1x8x8xf32>
    %147 = arith.mulf %142, %146 : vector<1x8x8xf32>
    %148 = arith.truncf %147 : vector<1x8x8xf32> to vector<1x8x8xbf16>
    %149 = arith.truncf %130 : vector<1x8x8xf32> to vector<1x8x8xbf16>
    "tpu.trace_start"() <{level = 10 : i32, message = "bqk,bkd->bqd"}> : () -> ()
    %cst_56 = arith.constant dense<0.000000e+00> : vector<1x8x8xf32>
    %150 = tpu.matmul %148, %149, %cst_56 {dimension_numbers = #tpu.dot_dimension_numbers<[2], [1], [1], [2], [0, 0, 0, 1, 1, 2], [0], [0]>} : vector<1x8x8xbf16>, vector<1x8x8xbf16>, vector<1x8x8xf32> -> vector<1x8x8xf32>
    "tpu.trace_stop"() : () -> ()
    %151 = vector.shape_cast %150 : vector<1x8x8xf32> to vector<8x8xf32>
    %c0_57 = arith.constant 0 : index
    %c24 = arith.constant 24 : index
    %152 = vector.load %arg17[%c0_57, %c24] : memref<8x32xf32, #tpu.memory_space<vmem>>, vector<8x8xf32>
    tpu.vector_store %arg17[%c0_57, %c24], %151 {strides = array<i32>} : memref<8x32xf32, #tpu.memory_space<vmem>>, vector<8x8xf32>,
    %c0_58 = arith.constant 0 : index
    %c0_59 = arith.constant 0 : index
    %153 = vector.load %arg17[%c0_58, %c0_59] : memref<8x32xf32, #tpu.memory_space<vmem>>, vector<8x32xf32>
    %154 = arith.truncf %153 : vector<8x32xf32> to vector<8x32xbf16>
    %c0_60 = arith.constant 0 : index
    %c0_61 = arith.constant 0 : index
    %c0_62 = arith.constant 0 : index
    %155 = vector.load %arg7[%c0_60, %c0_61, %c0_62] : memref<2x32x32xbf16, #tpu.memory_space<vmem>>, vector<1x32x32xbf16>
    %156 = vector.shape_cast %155 : vector<1x32x32xbf16> to vector<32x32xbf16>
    %cst_63 = arith.constant dense<0.000000e+00> : vector<8x32xf32>
    %157 = tpu.matmul %154, %156, %cst_63 {dimension_numbers = #tpu.dot_dimension_numbers<[1], [0], [0], [1], [0, 0, 1, 1], [], []>} : vector<8x32xbf16>, vector<32x32xbf16>, vector<8x32xf32> -> vector<8x32xf32>
    %158 = vector.broadcast %16 : vector<1x32xf32> to vector<8x32xf32>
    %159 = arith.addf %157, %158 : vector<8x32xf32>
    %160 = arith.addf %6, %159 : vector<8x32xf32>
    %cst_64 = arith.constant dense<0.000000e+00> : vector<8xf32>
    %161 = vector.multi_reduction <add>, %160, %cst_64 [1] : vector<8x32xf32> to vector<8xf32>
    %162 = vector.shape_cast %161 : vector<8xf32> to vector<8x1xf32>
    %cst_65 = arith.constant 3.200000e+01 : f32
    %163 = vector.broadcast %cst_65 : f32 to vector<8x1xf32>
    %164 = arith.divf %162, %163 : vector<8x1xf32>
    %165 = vector.broadcast %164 : vector<8x1xf32> to vector<8x32xf32>
    %166 = arith.subf %160, %165 : vector<8x32xf32>
    %167 = arith.mulf %166, %166 : vector<8x32xf32>
    %cst_66 = arith.constant dense<0.000000e+00> : vector<8xf32>
    %168 = vector.multi_reduction <add>, %167, %cst_66 [1] : vector<8x32xf32> to vector<8xf32>
    %169 = vector.shape_cast %168 : vector<8xf32> to vector<8x1xf32>
    %cst_67 = arith.constant 3.200000e+01 : f32
    %170 = vector.broadcast %cst_67 : f32 to vector<8x1xf32>
    %171 = arith.divf %169, %170 : vector<8x1xf32>
    %cst_68 = arith.constant 9.99999974E-6 : f32
    %172 = vector.broadcast %cst_68 : f32 to vector<8x1xf32>
    %173 = arith.addf %171, %172 : vector<8x1xf32>
    %174 = math.rsqrt %173 : vector<8x1xf32>
    %175 = vector.broadcast %174 : vector<8x1xf32> to vector<8x32xf32>
    %176 = arith.mulf %166, %175 : vector<8x32xf32>
    %177 = vector.broadcast %20 : vector<1x32xf32> to vector<8x32xf32>
    %178 = arith.mulf %176, %177 : vector<8x32xf32>
    %179 = vector.broadcast %22 : vector<1x32xf32> to vector<8x32xf32>
    %180 = arith.addf %178, %179 : vector<8x32xf32>
    %181 = arith.truncf %180 : vector<8x32xf32> to vector<8x32xbf16>
    %c0_69 = arith.constant 0 : index
    %c0_70 = arith.constant 0 : index
    %c0_71 = arith.constant 0 : index
    %182 = vector.load %arg8[%c0_69, %c0_70, %c0_71] : memref<2x32x64xbf16, #tpu.memory_space<vmem>>, vector<1x32x64xbf16>
    %183 = vector.shape_cast %182 : vector<1x32x64xbf16> to vector<32x64xbf16>
    %cst_72 = arith.constant dense<0.000000e+00> : vector<8x64xf32>
    %184 = tpu.matmul %181, %183, %cst_72 {dimension_numbers = #tpu.dot_dimension_numbers<[1], [0], [0], [1], [0, 0, 1, 1], [], []>} : vector<8x32xbf16>, vector<32x64xbf16>, vector<8x64xf32> -> vector<8x64xf32>
    %c0_73 = arith.constant 0 : index
    %c0_74 = arith.constant 0 : index
    %c0_75 = arith.constant 0 : index
    %185 = vector.load %arg9[%c0_73, %c0_74, %c0_75] : memref<2x1x64xf32, #tpu.memory_space<vmem>>, vector<1x1x64xf32>
    %186 = vector.shape_cast %185 : vector<1x1x64xf32> to vector<1x64xf32>
    %187 = vector.broadcast %186 : vector<1x64xf32> to vector<8x64xf32>
    %188 = arith.addf %184, %187 : vector<8x64xf32>
    %cst_76 = arith.constant 0.000000e+00 : f32
    %189 = vector.broadcast %cst_76 : f32 to vector<8x64xf32>
    %190 = arith.maximumf %188, %189 : vector<8x64xf32>
    %191 = arith.truncf %190 : vector<8x64xf32> to vector<8x64xbf16>
    %c0_77 = arith.constant 0 : index
    %c0_78 = arith.constant 0 : index
    %c0_79 = arith.constant 0 : index
    %192 = vector.load %arg10[%c0_77, %c0_78, %c0_79] : memref<2x64x32xbf16, #tpu.memory_space<vmem>>, vector<1x64x32xbf16>
    %193 = vector.shape_cast %192 : vector<1x64x32xbf16> to vector<64x32xbf16>
    %cst_80 = arith.constant dense<0.000000e+00> : vector<8x32xf32>
    %194 = tpu.matmul %191, %193, %cst_80 {dimension_numbers = #tpu.dot_dimension_numbers<[1], [0], [0], [1], [0, 0, 1, 1], [], []>} : vector<8x64xbf16>, vector<64x32xbf16>, vector<8x32xf32> -> vector<8x32xf32>
    %195 = vector.broadcast %18 : vector<1x32xf32> to vector<8x32xf32>
    %196 = arith.addf %194, %195 : vector<8x32xf32>
    %197 = arith.addf %180, %196 : vector<8x32xf32>
    %cst_81 = arith.constant dense<0.000000e+00> : vector<8xf32>
    %198 = vector.multi_reduction <add>, %197, %cst_81 [1] : vector<8x32xf32> to vector<8xf32>
    %199 = vector.shape_cast %198 : vector<8xf32> to vector<8x1xf32>
    %cst_82 = arith.constant 3.200000e+01 : f32
    %200 = vector.broadcast %cst_82 : f32 to vector<8x1xf32>
    %201 = arith.divf %199, %200 : vector<8x1xf32>
    %202 = vector.broadcast %201 : vector<8x1xf32> to vector<8x32xf32>
    %203 = arith.subf %197, %202 : vector<8x32xf32>
    %204 = arith.mulf %203, %203 : vector<8x32xf32>
    %cst_83 = arith.constant dense<0.000000e+00> : vector<8xf32>
    %205 = vector.multi_reduction <add>, %204, %cst_83 [1] : vector<8x32xf32> to vector<8xf32>
    %206 = vector.shape_cast %205 : vector<8xf32> to vector<8x1xf32>
    %cst_84 = arith.constant 3.200000e+01 : f32
    %207 = vector.broadcast %cst_84 : f32 to vector<8x1xf32>
    %208 = arith.divf %206, %207 : vector<8x1xf32>
    %cst_85 = arith.constant 9.99999974E-6 : f32
    %209 = vector.broadcast %cst_85 : f32 to vector<8x1xf32>
    %210 = arith.addf %208, %209 : vector<8x1xf32>
    %211 = math.rsqrt %210 : vector<8x1xf32>
    %212 = vector.broadcast %211 : vector<8x1xf32> to vector<8x32xf32>
    %213 = arith.mulf %203, %212 : vector<8x32xf32>
    %214 = vector.broadcast %24 : vector<1x32xf32> to vector<8x32xf32>
    %215 = arith.mulf %213, %214 : vector<8x32xf32>
    %216 = vector.broadcast %26 : vector<1x32xf32> to vector<8x32xf32>
    %217 = arith.addf %215, %216 : vector<8x32xf32>
    %c7 = arith.constant 7 : index
    %c0_86 = arith.constant 0 : index
    %c0_87 = arith.constant 0 : index
    %218 = vector.load %arg11[%c7, %c0_86, %c0_87] : memref<14x1x32xf32, #tpu.memory_space<vmem>>, vector<1x1x32xf32>
    %219 = vector.shape_cast %218 : vector<1x1x32xf32> to vector<1x32xf32>
    %c8_88 = arith.constant 8 : index
    %c0_89 = arith.constant 0 : index
    %c0_90 = arith.constant 0 : index
    %220 = vector.load %arg11[%c8_88, %c0_89, %c0_90] : memref<14x1x32xf32, #tpu.memory_space<vmem>>, vector<1x1x32xf32>
    %221 = vector.shape_cast %220 : vector<1x1x32xf32> to vector<1x32xf32>
    %c9 = arith.constant 9 : index
    %c0_91 = arith.constant 0 : index
    %c0_92 = arith.constant 0 : index
    %222 = vector.load %arg11[%c9, %c0_91, %c0_92] : memref<14x1x32xf32, #tpu.memory_space<vmem>>, vector<1x1x32xf32>
    %223 = vector.shape_cast %222 : vector<1x1x32xf32> to vector<1x32xf32>
    %c10 = arith.constant 10 : index
    %c0_93 = arith.constant 0 : index
    %c0_94 = arith.constant 0 : index
    %224 = vector.load %arg11[%c10, %c0_93, %c0_94] : memref<14x1x32xf32, #tpu.memory_space<vmem>>, vector<1x1x32xf32>
    %225 = vector.shape_cast %224 : vector<1x1x32xf32> to vector<1x32xf32>
    %c11 = arith.constant 11 : index
    %c0_95 = arith.constant 0 : index
    %c0_96 = arith.constant 0 : index
    %226 = vector.load %arg11[%c11, %c0_95, %c0_96] : memref<14x1x32xf32, #tpu.memory_space<vmem>>, vector<1x1x32xf32>
    %227 = vector.shape_cast %226 : vector<1x1x32xf32> to vector<1x32xf32>
    %c12 = arith.constant 12 : index
    %c0_97 = arith.constant 0 : index
    %c0_98 = arith.constant 0 : index
    %228 = vector.load %arg11[%c12, %c0_97, %c0_98] : memref<14x1x32xf32, #tpu.memory_space<vmem>>, vector<1x1x32xf32>
    %229 = vector.shape_cast %228 : vector<1x1x32xf32> to vector<1x32xf32>
    %c13 = arith.constant 13 : index
    %c0_99 = arith.constant 0 : index
    %c0_100 = arith.constant 0 : index
    %230 = vector.load %arg11[%c13, %c0_99, %c0_100] : memref<14x1x32xf32, #tpu.memory_space<vmem>>, vector<1x1x32xf32>
    %231 = vector.shape_cast %230 : vector<1x1x32xf32> to vector<1x32xf32>
    %232 = arith.truncf %217 : vector<8x32xf32> to vector<8x32xbf16>
    %c1_101 = arith.constant 1 : index
    %c0_102 = arith.constant 0 : index
    %c0_103 = arith.constant 0 : index
    %233 = vector.load %arg4[%c1_101, %c0_102, %c0_103] : memref<2x32x32xbf16, #tpu.memory_space<vmem>>, vector<1x32x32xbf16>
    %234 = vector.shape_cast %233 : vector<1x32x32xbf16> to vector<32x32xbf16>
    %cst_104 = arith.constant dense<0.000000e+00> : vector<8x32xf32>
    %235 = tpu.matmul %232, %234, %cst_104 {dimension_numbers = #tpu.dot_dimension_numbers<[1], [0], [0], [1], [0, 0, 1, 1], [], []>} : vector<8x32xbf16>, vector<32x32xbf16>, vector<8x32xf32> -> vector<8x32xf32>
    %236 = vector.broadcast %219 : vector<1x32xf32> to vector<8x32xf32>
    %237 = arith.addf %235, %236 : vector<8x32xf32>
    %238 = arith.truncf %237 : vector<8x32xf32> to vector<8x32xbf16>
    %c1_105 = arith.constant 1 : index
    %c0_106 = arith.constant 0 : index
    %c0_107 = arith.constant 0 : index
    %239 = vector.load %arg5[%c1_105, %c0_106, %c0_107] : memref<2x32x96xbf16, #tpu.memory_space<vmem>>, vector<1x32x96xbf16>
    %240 = vector.shape_cast %239 : vector<1x32x96xbf16> to vector<32x96xbf16>
    %cst_108 = arith.constant dense<0.000000e+00> : vector<8x96xf32>
    %241 = tpu.matmul %238, %240, %cst_108 {dimension_numbers = #tpu.dot_dimension_numbers<[1], [0], [0], [1], [0, 0, 1, 1], [], []>} : vector<8x32xbf16>, vector<32x96xbf16>, vector<8x96xf32> -> vector<8x96xf32>
    %c1_109 = arith.constant 1 : index
    %c0_110 = arith.constant 0 : index
    %c0_111 = arith.constant 0 : index
    %242 = vector.load %arg6[%c1_109, %c0_110, %c0_111] : memref<2x1x96xf32, #tpu.memory_space<vmem>>, vector<1x1x96xf32>
    %243 = vector.shape_cast %242 : vector<1x1x96xf32> to vector<1x96xf32>
    %244 = vector.broadcast %243 : vector<1x96xf32> to vector<8x96xf32>
    %245 = arith.addf %241, %244 : vector<8x96xf32>
    %246 = vector.extract_strided_slice %245 {offsets = [0, 0], sizes = [8, 8], strides = [1, 1]} : vector<8x96xf32> to vector<8x8xf32>
    %247 = vector.shape_cast %246 : vector<8x8xf32> to vector<1x8x8xf32>
    %248 = vector.extract_strided_slice %245 {offsets = [0, 32], sizes = [8, 8], strides = [1, 1]} : vector<8x96xf32> to vector<8x8xf32>
    %249 = vector.shape_cast %248 : vector<8x8xf32> to vector<1x8x8xf32>
    %250 = vector.extract_strided_slice %245 {offsets = [0, 64], sizes = [8, 8], strides = [1, 1]} : vector<8x96xf32> to vector<8x8xf32>
    %251 = vector.shape_cast %250 : vector<8x8xf32> to vector<1x8x8xf32>
    %252 = arith.truncf %247 : vector<1x8x8xf32> to vector<1x8x8xbf16>
    %253 = arith.truncf %249 : vector<1x8x8xf32> to vector<1x8x8xbf16>
    "tpu.trace_start"() <{level = 10 : i32, message = "bqd,bkd->bqk"}> : () -> ()
    %cst_112 = arith.constant dense<0.000000e+00> : vector<1x8x8xf32>
    %254 = tpu.matmul %252, %253, %cst_112 {dimension_numbers = #tpu.dot_dimension_numbers<[2], [2], [1], [1], [0, 0, 0, 1, 1, 1], [0], [0]>} : vector<1x8x8xbf16>, vector<1x8x8xbf16>, vector<1x8x8xf32> -> vector<1x8x8xf32>
    "tpu.trace_stop"() : () -> ()
    %cst_113 = arith.constant 0.353553385 : f32
    %255 = vector.broadcast %cst_113 : f32 to vector<1x8x8xf32>
    %256 = arith.mulf %254, %255 : vector<1x8x8xf32>
    %257 = vector.shape_cast %12 : vector<8x8xf32> to vector<1x8x8xf32>
    %258 = arith.addf %256, %257 : vector<1x8x8xf32>
    %cst_114 = arith.constant dense<0xFF800000> : vector<1x8xf32>
    %259 = vector.multi_reduction <maximumf>, %258, %cst_114 [2] : vector<1x8x8xf32> to vector<1x8xf32>
    %260 = vector.shape_cast %259 : vector<1x8xf32> to vector<1x8x1xf32>
    %261 = vector.broadcast %260 : vector<1x8x1xf32> to vector<1x8x8xf32>
    %262 = arith.subf %258, %261 : vector<1x8x8xf32>
    %263 = math.exp %262 : vector<1x8x8xf32>
    %cst_115 = arith.constant dense<0.000000e+00> : vector<1x8xf32>
    %264 = vector.multi_reduction <add>, %263, %cst_115 [2] : vector<1x8x8xf32> to vector<1x8xf32>
    %265 = vector.shape_cast %264 : vector<1x8xf32> to vector<1x8x1xf32>
    %266 = tpu.reciprocal %265 {approx = true} : vector<1x8x1xf32> -> vector<1x8x1xf32>
    %267 = vector.broadcast %266 : vector<1x8x1xf32> to vector<1x8x8xf32>
    %268 = arith.mulf %263, %267 : vector<1x8x8xf32>
    %269 = arith.truncf %268 : vector<1x8x8xf32> to vector<1x8x8xbf16>
    %270 = arith.truncf %251 : vector<1x8x8xf32> to vector<1x8x8xbf16>
    "tpu.trace_start"() <{level = 10 : i32, message = "bqk,bkd->bqd"}> : () -> ()
    %cst_116 = arith.constant dense<0.000000e+00> : vector<1x8x8xf32>
    %271 = tpu.matmul %269, %270, %cst_116 {dimension_numbers = #tpu.dot_dimension_numbers<[2], [1], [1], [2], [0, 0, 0, 1, 1, 2], [0], [0]>} : vector<1x8x8xbf16>, vector<1x8x8xbf16>, vector<1x8x8xf32> -> vector<1x8x8xf32>
    "tpu.trace_stop"() : () -> ()
    %272 = vector.shape_cast %271 : vector<1x8x8xf32> to vector<8x8xf32>
    %c0_117 = arith.constant 0 : index
    %c0_118 = arith.constant 0 : index
    %273 = vector.load %arg17[%c0_117, %c0_118] : memref<8x32xf32, #tpu.memory_space<vmem>>, vector<8x8xf32>
    tpu.vector_store %arg17[%c0_117, %c0_118], %272 {strides = array<i32>} : memref<8x32xf32, #tpu.memory_space<vmem>>, vector<8x8xf32>,
    %274 = vector.extract_strided_slice %245 {offsets = [0, 8], sizes = [8, 8], strides = [1, 1]} : vector<8x96xf32> to vector<8x8xf32>
    %275 = vector.shape_cast %274 : vector<8x8xf32> to vector<1x8x8xf32>
    %276 = vector.extract_strided_slice %245 {offsets = [0, 40], sizes = [8, 8], strides = [1, 1]} : vector<8x96xf32> to vector<8x8xf32>
    %277 = vector.shape_cast %276 : vector<8x8xf32> to vector<1x8x8xf32>
    %278 = vector.extract_strided_slice %245 {offsets = [0, 72], sizes = [8, 8], strides = [1, 1]} : vector<8x96xf32> to vector<8x8xf32>
    %279 = vector.shape_cast %278 : vector<8x8xf32> to vector<1x8x8xf32>
    %280 = arith.truncf %275 : vector<1x8x8xf32> to vector<1x8x8xbf16>
    %281 = arith.truncf %277 : vector<1x8x8xf32> to vector<1x8x8xbf16>
    "tpu.trace_start"() <{level = 10 : i32, message = "bqd,bkd->bqk"}> : () -> ()
    %cst_119 = arith.constant dense<0.000000e+00> : vector<1x8x8xf32>
    %282 = tpu.matmul %280, %281, %cst_119 {dimension_numbers = #tpu.dot_dimension_numbers<[2], [2], [1], [1], [0, 0, 0, 1, 1, 1], [0], [0]>} : vector<1x8x8xbf16>, vector<1x8x8xbf16>, vector<1x8x8xf32> -> vector<1x8x8xf32>
    "tpu.trace_stop"() : () -> ()
    %cst_120 = arith.constant 0.353553385 : f32
    %283 = vector.broadcast %cst_120 : f32 to vector<1x8x8xf32>
    %284 = arith.mulf %282, %283 : vector<1x8x8xf32>
    %285 = vector.shape_cast %12 : vector<8x8xf32> to vector<1x8x8xf32>
    %286 = arith.addf %284, %285 : vector<1x8x8xf32>
    %cst_121 = arith.constant dense<0xFF800000> : vector<1x8xf32>
    %287 = vector.multi_reduction <maximumf>, %286, %cst_121 [2] : vector<1x8x8xf32> to vector<1x8xf32>
    %288 = vector.shape_cast %287 : vector<1x8xf32> to vector<1x8x1xf32>
    %289 = vector.broadcast %288 : vector<1x8x1xf32> to vector<1x8x8xf32>
    %290 = arith.subf %286, %289 : vector<1x8x8xf32>
    %291 = math.exp %290 : vector<1x8x8xf32>
    %cst_122 = arith.constant dense<0.000000e+00> : vector<1x8xf32>
    %292 = vector.multi_reduction <add>, %291, %cst_122 [2] : vector<1x8x8xf32> to vector<1x8xf32>
    %293 = vector.shape_cast %292 : vector<1x8xf32> to vector<1x8x1xf32>
    %294 = tpu.reciprocal %293 {approx = true} : vector<1x8x1xf32> -> vector<1x8x1xf32>
    %295 = vector.broadcast %294 : vector<1x8x1xf32> to vector<1x8x8xf32>
    %296 = arith.mulf %291, %295 : vector<1x8x8xf32>
    %297 = arith.truncf %296 : vector<1x8x8xf32> to vector<1x8x8xbf16>
    %298 = arith.truncf %279 : vector<1x8x8xf32> to vector<1x8x8xbf16>
    "tpu.trace_start"() <{level = 10 : i32, message = "bqk,bkd->bqd"}> : () -> ()
    %cst_123 = arith.constant dense<0.000000e+00> : vector<1x8x8xf32>
    %299 = tpu.matmul %297, %298, %cst_123 {dimension_numbers = #tpu.dot_dimension_numbers<[2], [1], [1], [2], [0, 0, 0, 1, 1, 2], [0], [0]>} : vector<1x8x8xbf16>, vector<1x8x8xbf16>, vector<1x8x8xf32> -> vector<1x8x8xf32>
    "tpu.trace_stop"() : () -> ()
    %300 = vector.shape_cast %299 : vector<1x8x8xf32> to vector<8x8xf32>
    %c0_124 = arith.constant 0 : index
    %c8_125 = arith.constant 8 : index
    %301 = vector.load %arg17[%c0_124, %c8_125] : memref<8x32xf32, #tpu.memory_space<vmem>>, vector<8x8xf32>
    tpu.vector_store %arg17[%c0_124, %c8_125], %300 {strides = array<i32>} : memref<8x32xf32, #tpu.memory_space<vmem>>, vector<8x8xf32>,
    %302 = vector.extract_strided_slice %245 {offsets = [0, 16], sizes = [8, 8], strides = [1, 1]} : vector<8x96xf32> to vector<8x8xf32>
    %303 = vector.shape_cast %302 : vector<8x8xf32> to vector<1x8x8xf32>
    %304 = vector.extract_strided_slice %245 {offsets = [0, 48], sizes = [8, 8], strides = [1, 1]} : vector<8x96xf32> to vector<8x8xf32>
    %305 = vector.shape_cast %304 : vector<8x8xf32> to vector<1x8x8xf32>
    %306 = vector.extract_strided_slice %245 {offsets = [0, 80], sizes = [8, 8], strides = [1, 1]} : vector<8x96xf32> to vector<8x8xf32>
    %307 = vector.shape_cast %306 : vector<8x8xf32> to vector<1x8x8xf32>
    %308 = arith.truncf %303 : vector<1x8x8xf32> to vector<1x8x8xbf16>
    %309 = arith.truncf %305 : vector<1x8x8xf32> to vector<1x8x8xbf16>
    "tpu.trace_start"() <{level = 10 : i32, message = "bqd,bkd->bqk"}> : () -> ()
    %cst_126 = arith.constant dense<0.000000e+00> : vector<1x8x8xf32>
    %310 = tpu.matmul %308, %309, %cst_126 {dimension_numbers = #tpu.dot_dimension_numbers<[2], [2], [1], [1], [0, 0, 0, 1, 1, 1], [0], [0]>} : vector<1x8x8xbf16>, vector<1x8x8xbf16>, vector<1x8x8xf32> -> vector<1x8x8xf32>
    "tpu.trace_stop"() : () -> ()
    %cst_127 = arith.constant 0.353553385 : f32
    %311 = vector.broadcast %cst_127 : f32 to vector<1x8x8xf32>
    %312 = arith.mulf %310, %311 : vector<1x8x8xf32>
    %313 = vector.shape_cast %12 : vector<8x8xf32> to vector<1x8x8xf32>
    %314 = arith.addf %312, %313 : vector<1x8x8xf32>
    %cst_128 = arith.constant dense<0xFF800000> : vector<1x8xf32>
    %315 = vector.multi_reduction <maximumf>, %314, %cst_128 [2] : vector<1x8x8xf32> to vector<1x8xf32>
    %316 = vector.shape_cast %315 : vector<1x8xf32> to vector<1x8x1xf32>
    %317 = vector.broadcast %316 : vector<1x8x1xf32> to vector<1x8x8xf32>
    %318 = arith.subf %314, %317 : vector<1x8x8xf32>
    %319 = math.exp %318 : vector<1x8x8xf32>
    %cst_129 = arith.constant dense<0.000000e+00> : vector<1x8xf32>
    %320 = vector.multi_reduction <add>, %319, %cst_129 [2] : vector<1x8x8xf32> to vector<1x8xf32>
    %321 = vector.shape_cast %320 : vector<1x8xf32> to vector<1x8x1xf32>
    %322 = tpu.reciprocal %321 {approx = true} : vector<1x8x1xf32> -> vector<1x8x1xf32>
    %323 = vector.broadcast %322 : vector<1x8x1xf32> to vector<1x8x8xf32>
    %324 = arith.mulf %319, %323 : vector<1x8x8xf32>
    %325 = arith.truncf %324 : vector<1x8x8xf32> to vector<1x8x8xbf16>
    %326 = arith.truncf %307 : vector<1x8x8xf32> to vector<1x8x8xbf16>
    "tpu.trace_start"() <{level = 10 : i32, message = "bqk,bkd->bqd"}> : () -> ()
    %cst_130 = arith.constant dense<0.000000e+00> : vector<1x8x8xf32>
    %327 = tpu.matmul %325, %326, %cst_130 {dimension_numbers = #tpu.dot_dimension_numbers<[2], [1], [1], [2], [0, 0, 0, 1, 1, 2], [0], [0]>} : vector<1x8x8xbf16>, vector<1x8x8xbf16>, vector<1x8x8xf32> -> vector<1x8x8xf32>
    "tpu.trace_stop"() : () -> ()
    %328 = vector.shape_cast %327 : vector<1x8x8xf32> to vector<8x8xf32>
    %c0_131 = arith.constant 0 : index
    %c16_132 = arith.constant 16 : index
    %329 = vector.load %arg17[%c0_131, %c16_132] : memref<8x32xf32, #tpu.memory_space<vmem>>, vector<8x8xf32>
    tpu.vector_store %arg17[%c0_131, %c16_132], %328 {strides = array<i32>} : memref<8x32xf32, #tpu.memory_space<vmem>>, vector<8x8xf32>,
    %330 = vector.extract_strided_slice %245 {offsets = [0, 24], sizes = [8, 8], strides = [1, 1]} : vector<8x96xf32> to vector<8x8xf32>
    %331 = vector.shape_cast %330 : vector<8x8xf32> to vector<1x8x8xf32>
    %332 = vector.extract_strided_slice %245 {offsets = [0, 56], sizes = [8, 8], strides = [1, 1]} : vector<8x96xf32> to vector<8x8xf32>
    %333 = vector.shape_cast %332 : vector<8x8xf32> to vector<1x8x8xf32>
    %334 = vector.extract_strided_slice %245 {offsets = [0, 88], sizes = [8, 8], strides = [1, 1]} : vector<8x96xf32> to vector<8x8xf32>
    %335 = vector.shape_cast %334 : vector<8x8xf32> to vector<1x8x8xf32>
    %336 = arith.truncf %331 : vector<1x8x8xf32> to vector<1x8x8xbf16>
    %337 = arith.truncf %333 : vector<1x8x8xf32> to vector<1x8x8xbf16>
    "tpu.trace_start"() <{level = 10 : i32, message = "bqd,bkd->bqk"}> : () -> ()
    %cst_133 = arith.constant dense<0.000000e+00> : vector<1x8x8xf32>
    %338 = tpu.matmul %336, %337, %cst_133 {dimension_numbers = #tpu.dot_dimension_numbers<[2], [2], [1], [1], [0, 0, 0, 1, 1, 1], [0], [0]>} : vector<1x8x8xbf16>, vector<1x8x8xbf16>, vector<1x8x8xf32> -> vector<1x8x8xf32>
    "tpu.trace_stop"() : () -> ()
    %cst_134 = arith.constant 0.353553385 : f32
    %339 = vector.broadcast %cst_134 : f32 to vector<1x8x8xf32>
    %340 = arith.mulf %338, %339 : vector<1x8x8xf32>
    %341 = vector.shape_cast %12 : vector<8x8xf32> to vector<1x8x8xf32>
    %342 = arith.addf %340, %341 : vector<1x8x8xf32>
    %cst_135 = arith.constant dense<0xFF800000> : vector<1x8xf32>
    %343 = vector.multi_reduction <maximumf>, %342, %cst_135 [2] : vector<1x8x8xf32> to vector<1x8xf32>
    %344 = vector.shape_cast %343 : vector<1x8xf32> to vector<1x8x1xf32>
    %345 = vector.broadcast %344 : vector<1x8x1xf32> to vector<1x8x8xf32>
    %346 = arith.subf %342, %345 : vector<1x8x8xf32>
    %347 = math.exp %346 : vector<1x8x8xf32>
    %cst_136 = arith.constant dense<0.000000e+00> : vector<1x8xf32>
    %348 = vector.multi_reduction <add>, %347, %cst_136 [2] : vector<1x8x8xf32> to vector<1x8xf32>
    %349 = vector.shape_cast %348 : vector<1x8xf32> to vector<1x8x1xf32>
    %350 = tpu.reciprocal %349 {approx = true} : vector<1x8x1xf32> -> vector<1x8x1xf32>
    %351 = vector.broadcast %350 : vector<1x8x1xf32> to vector<1x8x8xf32>
    %352 = arith.mulf %347, %351 : vector<1x8x8xf32>
    %353 = arith.truncf %352 : vector<1x8x8xf32> to vector<1x8x8xbf16>
    %354 = arith.truncf %335 : vector<1x8x8xf32> to vector<1x8x8xbf16>
    "tpu.trace_start"() <{level = 10 : i32, message = "bqk,bkd->bqd"}> : () -> ()
    %cst_137 = arith.constant dense<0.000000e+00> : vector<1x8x8xf32>
    %355 = tpu.matmul %353, %354, %cst_137 {dimension_numbers = #tpu.dot_dimension_numbers<[2], [1], [1], [2], [0, 0, 0, 1, 1, 2], [0], [0]>} : vector<1x8x8xbf16>, vector<1x8x8xbf16>, vector<1x8x8xf32> -> vector<1x8x8xf32>
    "tpu.trace_stop"() : () -> ()
    %356 = vector.shape_cast %355 : vector<1x8x8xf32> to vector<8x8xf32>
    %c0_138 = arith.constant 0 : index
    %c24_139 = arith.constant 24 : index
    %357 = vector.load %arg17[%c0_138, %c24_139] : memref<8x32xf32, #tpu.memory_space<vmem>>, vector<8x8xf32>
    tpu.vector_store %arg17[%c0_138, %c24_139], %356 {strides = array<i32>} : memref<8x32xf32, #tpu.memory_space<vmem>>, vector<8x8xf32>,
    %c0_140 = arith.constant 0 : index
    %c0_141 = arith.constant 0 : index
    %358 = vector.load %arg17[%c0_140, %c0_141] : memref<8x32xf32, #tpu.memory_space<vmem>>, vector<8x32xf32>
    %359 = arith.truncf %358 : vector<8x32xf32> to vector<8x32xbf16>
    %c1_142 = arith.constant 1 : index
    %c0_143 = arith.constant 0 : index
    %c0_144 = arith.constant 0 : index
    %360 = vector.load %arg7[%c1_142, %c0_143, %c0_144] : memref<2x32x32xbf16, #tpu.memory_space<vmem>>, vector<1x32x32xbf16>
    %361 = vector.shape_cast %360 : vector<1x32x32xbf16> to vector<32x32xbf16>
    %cst_145 = arith.constant dense<0.000000e+00> : vector<8x32xf32>
    %362 = tpu.matmul %359, %361, %cst_145 {dimension_numbers = #tpu.dot_dimension_numbers<[1], [0], [0], [1], [0, 0, 1, 1], [], []>} : vector<8x32xbf16>, vector<32x32xbf16>, vector<8x32xf32> -> vector<8x32xf32>
    %363 = vector.broadcast %221 : vector<1x32xf32> to vector<8x32xf32>
    %364 = arith.addf %362, %363 : vector<8x32xf32>
    %365 = arith.addf %217, %364 : vector<8x32xf32>
    %cst_146 = arith.constant dense<0.000000e+00> : vector<8xf32>
    %366 = vector.multi_reduction <add>, %365, %cst_146 [1] : vector<8x32xf32> to vector<8xf32>
    %367 = vector.shape_cast %366 : vector<8xf32> to vector<8x1xf32>
    %cst_147 = arith.constant 3.200000e+01 : f32
    %368 = vector.broadcast %cst_147 : f32 to vector<8x1xf32>
    %369 = arith.divf %367, %368 : vector<8x1xf32>
    %370 = vector.broadcast %369 : vector<8x1xf32> to vector<8x32xf32>
    %371 = arith.subf %365, %370 : vector<8x32xf32>
    %372 = arith.mulf %371, %371 : vector<8x32xf32>
    %cst_148 = arith.constant dense<0.000000e+00> : vector<8xf32>
    %373 = vector.multi_reduction <add>, %372, %cst_148 [1] : vector<8x32xf32> to vector<8xf32>
    %374 = vector.shape_cast %373 : vector<8xf32> to vector<8x1xf32>
    %cst_149 = arith.constant 3.200000e+01 : f32
    %375 = vector.broadcast %cst_149 : f32 to vector<8x1xf32>
    %376 = arith.divf %374, %375 : vector<8x1xf32>
    %cst_150 = arith.constant 9.99999974E-6 : f32
    %377 = vector.broadcast %cst_150 : f32 to vector<8x1xf32>
    %378 = arith.addf %376, %377 : vector<8x1xf32>
    %379 = math.rsqrt %378 : vector<8x1xf32>
    %380 = vector.broadcast %379 : vector<8x1xf32> to vector<8x32xf32>
    %381 = arith.mulf %371, %380 : vector<8x32xf32>
    %382 = vector.broadcast %225 : vector<1x32xf32> to vector<8x32xf32>
    %383 = arith.mulf %381, %382 : vector<8x32xf32>
    %384 = vector.broadcast %227 : vector<1x32xf32> to vector<8x32xf32>
    %385 = arith.addf %383, %384 : vector<8x32xf32>
    %386 = arith.truncf %385 : vector<8x32xf32> to vector<8x32xbf16>
    %c1_151 = arith.constant 1 : index
    %c0_152 = arith.constant 0 : index
    %c0_153 = arith.constant 0 : index
    %387 = vector.load %arg8[%c1_151, %c0_152, %c0_153] : memref<2x32x64xbf16, #tpu.memory_space<vmem>>, vector<1x32x64xbf16>
    %388 = vector.shape_cast %387 : vector<1x32x64xbf16> to vector<32x64xbf16>
    %cst_154 = arith.constant dense<0.000000e+00> : vector<8x64xf32>
    %389 = tpu.matmul %386, %388, %cst_154 {dimension_numbers = #tpu.dot_dimension_numbers<[1], [0], [0], [1], [0, 0, 1, 1], [], []>} : vector<8x32xbf16>, vector<32x64xbf16>, vector<8x64xf32> -> vector<8x64xf32>
    %c1_155 = arith.constant 1 : index
    %c0_156 = arith.constant 0 : index
    %c0_157 = arith.constant 0 : index
    %390 = vector.load %arg9[%c1_155, %c0_156, %c0_157] : memref<2x1x64xf32, #tpu.memory_space<vmem>>, vector<1x1x64xf32>
    %391 = vector.shape_cast %390 : vector<1x1x64xf32> to vector<1x64xf32>
    %392 = vector.broadcast %391 : vector<1x64xf32> to vector<8x64xf32>
    %393 = arith.addf %389, %392 : vector<8x64xf32>
    %cst_158 = arith.constant 0.000000e+00 : f32
    %394 = vector.broadcast %cst_158 : f32 to vector<8x64xf32>
    %395 = arith.maximumf %393, %394 : vector<8x64xf32>
    %396 = arith.truncf %395 : vector<8x64xf32> to vector<8x64xbf16>
    %c1_159 = arith.constant 1 : index
    %c0_160 = arith.constant 0 : index
    %c0_161 = arith.constant 0 : index
    %397 = vector.load %arg10[%c1_159, %c0_160, %c0_161] : memref<2x64x32xbf16, #tpu.memory_space<vmem>>, vector<1x64x32xbf16>
    %398 = vector.shape_cast %397 : vector<1x64x32xbf16> to vector<64x32xbf16>
    %cst_162 = arith.constant dense<0.000000e+00> : vector<8x32xf32>
    %399 = tpu.matmul %396, %398, %cst_162 {dimension_numbers = #tpu.dot_dimension_numbers<[1], [0], [0], [1], [0, 0, 1, 1], [], []>} : vector<8x64xbf16>, vector<64x32xbf16>, vector<8x32xf32> -> vector<8x32xf32>
    %400 = vector.broadcast %223 : vector<1x32xf32> to vector<8x32xf32>
    %401 = arith.addf %399, %400 : vector<8x32xf32>
    %402 = arith.addf %385, %401 : vector<8x32xf32>
    %cst_163 = arith.constant dense<0.000000e+00> : vector<8xf32>
    %403 = vector.multi_reduction <add>, %402, %cst_163 [1] : vector<8x32xf32> to vector<8xf32>
    %404 = vector.shape_cast %403 : vector<8xf32> to vector<8x1xf32>
    %cst_164 = arith.constant 3.200000e+01 : f32
    %405 = vector.broadcast %cst_164 : f32 to vector<8x1xf32>
    %406 = arith.divf %404, %405 : vector<8x1xf32>
    %407 = vector.broadcast %406 : vector<8x1xf32> to vector<8x32xf32>
    %408 = arith.subf %402, %407 : vector<8x32xf32>
    %409 = arith.mulf %408, %408 : vector<8x32xf32>
    %cst_165 = arith.constant dense<0.000000e+00> : vector<8xf32>
    %410 = vector.multi_reduction <add>, %409, %cst_165 [1] : vector<8x32xf32> to vector<8xf32>
    %411 = vector.shape_cast %410 : vector<8xf32> to vector<8x1xf32>
    %cst_166 = arith.constant 3.200000e+01 : f32
    %412 = vector.broadcast %cst_166 : f32 to vector<8x1xf32>
    %413 = arith.divf %411, %412 : vector<8x1xf32>
    %cst_167 = arith.constant 9.99999974E-6 : f32
    %414 = vector.broadcast %cst_167 : f32 to vector<8x1xf32>
    %415 = arith.addf %413, %414 : vector<8x1xf32>
    %416 = math.rsqrt %415 : vector<8x1xf32>
    %417 = vector.broadcast %416 : vector<8x1xf32> to vector<8x32xf32>
    %418 = arith.mulf %408, %417 : vector<8x32xf32>
    %419 = vector.broadcast %229 : vector<1x32xf32> to vector<8x32xf32>
    %420 = arith.mulf %418, %419 : vector<8x32xf32>
    %421 = vector.broadcast %231 : vector<1x32xf32> to vector<8x32xf32>
    %422 = arith.addf %420, %421 : vector<8x32xf32>
    %423 = arith.truncf %422 : vector<8x32xf32> to vector<8x32xbf16>
    %c0_168 = arith.constant 0 : index
    %c0_169 = arith.constant 0 : index
    %424 = vector.load %arg12[%c0_168, %c0_169] : memref<32x32xbf16, #tpu.memory_space<vmem>>, vector<32x32xbf16>
    %cst_170 = arith.constant dense<0.000000e+00> : vector<8x32xf32>
    %425 = tpu.matmul %423, %424, %cst_170 {dimension_numbers = #tpu.dot_dimension_numbers<[1], [0], [0], [1], [0, 0, 1, 1], [], []>} : vector<8x32xbf16>, vector<32x32xbf16>, vector<8x32xf32> -> vector<8x32xf32>
    %c0_171 = arith.constant 0 : index
    %c0_172 = arith.constant 0 : index
    %426 = vector.load %arg13[%c0_171, %c0_172] : memref<1x32xf32, #tpu.memory_space<vmem>>, vector<1x32xf32>
    %427 = vector.broadcast %426 : vector<1x32xf32> to vector<8x32xf32>
    %428 = arith.addf %425, %427 : vector<8x32xf32>
    %cst_173 = arith.constant 0.000000e+00 : f32
    %429 = vector.broadcast %cst_173 : f32 to vector<8x32xf32>
    %430 = arith.maximumf %428, %429 : vector<8x32xf32>
    %431 = arith.truncf %430 : vector<8x32xf32> to vector<8x32xbf16>
    %c0_174 = arith.constant 0 : index
    %c0_175 = arith.constant 0 : index
    %432 = vector.load %arg14[%c0_174, %c0_175] : memref<32x128xbf16, #tpu.memory_space<vmem>>, vector<32x128xbf16>
    %cst_176 = arith.constant dense<0.000000e+00> : vector<8x128xf32>
    %433 = tpu.matmul %431, %432, %cst_176 {dimension_numbers = #tpu.dot_dimension_numbers<[1], [0], [0], [1], [0, 0, 1, 1], [], []>} : vector<8x32xbf16>, vector<32x128xbf16>, vector<8x128xf32> -> vector<8x128xf32>
    %c0_177 = arith.constant 0 : index
    %c0_178 = arith.constant 0 : index
    %434 = vector.load %arg15[%c0_177, %c0_178] : memref<1x128xf32, #tpu.memory_space<vmem>>, vector<1x128xf32>
    %435 = vector.broadcast %434 : vector<1x128xf32> to vector<8x128xf32>
    %436 = arith.addf %433, %435 : vector<8x128xf32>
    %c0_179 = arith.constant 0 : index
    %c0_180 = arith.constant 0 : index
    %437 = vector.load %arg16[%c0_179, %c0_180] : memref<8x128xf32, #tpu.memory_space<vmem>>, vector<8x128xf32>
    tpu.vector_store %arg16[%c0_179, %c0_180], %436 {strides = array<i32>} : memref<8x128xf32, #tpu.memory_space<vmem>>, vector<8x128xf32>,
    return
  }
  func.func @transform_0(%arg0: i32) -> (i32, i32) {
    %c0_i32 = arith.constant 0 : i32
    %c0_i32_0 = arith.constant 0 : i32
    return %arg0, %c0_i32 : i32, i32
  }
  func.func @transform_1(%arg0: i32) -> (i32, i32) {
    %c0_i32 = arith.constant 0 : i32
    %c0_i32_0 = arith.constant 0 : i32
    %c0_i32_1 = arith.constant 0 : i32
    return %c0_i32, %c0_i32_0 : i32, i32
  }
  func.func @transform_2(%arg0: i32) -> (i32, i32) {
    %c0_i32 = arith.constant 0 : i32
    %c0_i32_0 = arith.constant 0 : i32
    %c0_i32_1 = arith.constant 0 : i32
    return %c0_i32, %c0_i32_0 : i32, i32
  }
  func.func @transform_3(%arg0: i32) -> (i32, i32, i32) {
    %c0_i32 = arith.constant 0 : i32
    %c0_i32_0 = arith.constant 0 : i32
    %c0_i32_1 = arith.constant 0 : i32
    %c0_i32_2 = arith.constant 0 : i32
    return %c0_i32, %c0_i32_0, %c0_i32_1 : i32, i32, i32
  }
  func.func @transform_4(%arg0: i32) -> (i32, i32, i32) {
    %c0_i32 = arith.constant 0 : i32
    %c0_i32_0 = arith.constant 0 : i32
    %c0_i32_1 = arith.constant 0 : i32
    %c0_i32_2 = arith.constant 0 : i32
    return %c0_i32, %c0_i32_0, %c0_i32_1 : i32, i32, i32
  }
  func.func @transform_5(%arg0: i32) -> (i32, i32, i32) {
    %c0_i32 = arith.constant 0 : i32
    %c0_i32_0 = arith.constant 0 : i32
    %c0_i32_1 = arith.constant 0 : i32
    %c0_i32_2 = arith.constant 0 : i32
    return %c0_i32, %c0_i32_0, %c0_i32_1 : i32, i32, i32
  }
  func.func @transform_6(%arg0: i32) -> (i32, i32, i32) {
    %c0_i32 = arith.constant 0 : i32
    %c0_i32_0 = arith.constant 0 : i32
    %c0_i32_1 = arith.constant 0 : i32
    %c0_i32_2 = arith.constant 0 : i32
    return %c0_i32, %c0_i32_0, %c0_i32_1 : i32, i32, i32
  }
  func.func @transform_7(%arg0: i32) -> (i32, i32, i32) {
    %c0_i32 = arith.constant 0 : i32
    %c0_i32_0 = arith.constant 0 : i32
    %c0_i32_1 = arith.constant 0 : i32
    %c0_i32_2 = arith.constant 0 : i32
    return %c0_i32, %c0_i32_0, %c0_i32_1 : i32, i32, i32
  }
  func.func @transform_8(%arg0: i32) -> (i32, i32, i32) {
    %c0_i32 = arith.constant 0 : i32
    %c0_i32_0 = arith.constant 0 : i32
    %c0_i32_1 = arith.constant 0 : i32
    %c0_i32_2 = arith.constant 0 : i32
    return %c0_i32, %c0_i32_0, %c0_i32_1 : i32, i32, i32
  }
  func.func @transform_9(%arg0: i32) -> (i32, i32, i32) {
    %c0_i32 = arith.constant 0 : i32
    %c0_i32_0 = arith.constant 0 : i32
    %c0_i32_1 = arith.constant 0 : i32
    %c0_i32_2 = arith.constant 0 : i32
    return %c0_i32, %c0_i32_0, %c0_i32_1 : i32, i32, i32
  }
  func.func @transform_10(%arg0: i32) -> (i32, i32, i32) {
    %c0_i32 = arith.constant 0 : i32
    %c0_i32_0 = arith.constant 0 : i32
    %c0_i32_1 = arith.constant 0 : i32
    %c0_i32_2 = arith.constant 0 : i32
    return %c0_i32, %c0_i32_0, %c0_i32_1 : i32, i32, i32
  }
  func.func @transform_11(%arg0: i32) -> (i32, i32) {
    %c0_i32 = arith.constant 0 : i32
    %c0_i32_0 = arith.constant 0 : i32
    %c0_i32_1 = arith.constant 0 : i32
    return %c0_i32, %c0_i32_0 : i32, i32
  }
  func.func @transform_12(%arg0: i32) -> (i32, i32) {
    %c0_i32 = arith.constant 0 : i32
    %c0_i32_0 = arith.constant 0 : i32
    %c0_i32_1 = arith.constant 0 : i32
    return %c0_i32, %c0_i32_0 : i32, i32
  }
  func.func @transform_13(%arg0: i32) -> (i32, i32) {
    %c0_i32 = arith.constant 0 : i32
    %c0_i32_0 = arith.constant 0 : i32
    %c0_i32_1 = arith.constant 0 : i32
    return %c0_i32, %c0_i32_0 : i32, i32
  }
  func.func @transform_14(%arg0: i32) -> (i32, i32) {
    %c0_i32 = arith.constant 0 : i32
    %c0_i32_0 = arith.constant 0 : i32
    %c0_i32_1 = arith.constant 0 : i32
    return %c0_i32, %c0_i32_0 : i32, i32
  }
  func.func @transform_15(%arg0: i32) -> (i32, i32) {
    %c0_i32 = arith.constant 0 : i32
    %c0_i32_0 = arith.constant 0 : i32
    return %arg0, %c0_i32 : i32, i32
  }
}

</mosaic_0001>

<bundles_post_ra>
// kernel: tpu_custom_call.1
= control target key start
LH: loop header
LB: loop body
LE: loop exit
PB: predicated region body
PF: predicated region fallthrough
CT: control target
= control target key end

     0   :  { %s4360_s0 = inlined_call_operand.hbm [shape: f32[16,26], index: 0, kind: input, shape index: {}]   ;;  %s4361_s1 = inlined_call_operand.hbm [shape: bf16[26,32], index: 1, kind: input, shape index: {}]   ;;  %s4362_s2 = inlined_call_operand.hbm [shape: f32[1,32], index: 2, kind: input, shape index: {}]   ;;  %s4363_s3 = inlined_call_operand.vmem [shape: bf16[2,32,32], index: 3, kind: input, shape index: {}]   ;;  %s4364_s4 = inlined_call_operand.vmem [shape: bf16[2,32,96], index: 4, kind: input, shape index: {}]   ;;  %s4365_s5 = inlined_call_operand.hbm [shape: f32[2,1,96], index: 5, kind: input, shape index: {}]   ;;  %s4366_s6 = inlined_call_operand.vmem [shape: bf16[2,32,32], index: 6, kind: input, shape index: {}]   ;;  %s4367_s7 = inlined_call_operand.hbm [shape: bf16[2,32,64], index: 7, kind: input, shape index: {}]   ;;  %s4368_s8 = inlined_call_operand.hbm [shape: f32[2,1,64], index: 8, kind: input, shape index: {}]   ;;  %s4369_s9 = inlined_call_operand.vmem [shape: bf16[2,64,32], index: 9, kind: input, shape index: {}]   ;;  %s4370_s10 = inlined_call_operand.hbm [shape: f32[14,1,32], index: 10, kind: input, shape index: {}]   ;;  %s4371_s11 = inlined_call_operand.vmem [shape: bf16[32,32], index: 11, kind: input, shape index: {}]   ;;  %s4372_s12 = inlined_call_operand.vmem [shape: f32[1,32], index: 12, kind: input, shape index: {}]   ;;  %s4373_s13 = inlined_call_operand.hbm [shape: bf16[32,128], index: 13, kind: input, shape index: {}]   ;;  %s4374_s14 = inlined_call_operand.vmem [shape: f32[1,128], index: 14, kind: input, shape index: {}]   ;;  %s4375_s15 = inlined_call_operand.hbm [shape: f32[16,128], index: 15, kind: output, shape index: {}]  }
   0x1   :  { %4391 = sst [smem:[#allocation24_spill]] %s4361_s1 }
   0x2   :  { %4392 = sst [smem:[#allocation25_spill]] %s4362_s2 }
   0x3   :  { %4393 = sst [smem:[#allocation26_spill]] %s4365_s5 }
   0x4   :  { %4394 = sst [smem:[#allocation27_spill]] %s4367_s7 }
   0x5   :  { %4395 = sst [smem:[#allocation28_spill]] %s4368_s8 }
   0x6   :  { %4396 = sst [smem:[#allocation29_spill]] %s4370_s10 }
   0x7   :  { %4397 = sst [smem:[#allocation30_spill]] %s4372_s12 }
   0x8   :  { %4398 = sst [smem:[#allocation31_spill]] %s4373_s13 }
   0x9   :  { %4399 = sst [smem:[#allocation32_spill]] %s4374_s14 }
   0xa   :  { %4400 = sst [smem:[#allocation33_spill]] %s4375_s15 }
   0xb   :  { %20 = vsyncpa [#allocation4], 0 }
   0xc   :  { %22 = vsyncpa [#allocation4 + $0x1], 0 }
   0xd   :  { %23 = vsyncpa [#allocation7], 0 }
   0xe   :  { %24 = vsyncpa [#allocation10], 0 }
   0xf   :  { %25 = vsyncpa [#allocation13], 0 }
  0x10   :  { %26 = vsyncpa [#allocation16], 0 }
  0x11   :  { %27 = vsyncpa [#allocation5], 0 }
  0x12   :  { %29 = vsyncpa [#allocation5 + $0x1], 0  ;;  %s3775_s18 = smov 0   ;;  %s3777_s19 = smov 0  }
  0x13   :  { %s3779_s20 = smov 0   ;;  %s3781_s21 = smov 0  }
  0x14 LB: > { %s3666_s22 = smov [#allocation6]   ;;  %s3796_s24 = sadd.s32 4294967295, %s3664_s21   ;;  %s3664_s21 = sphi %s3781_s21, %s4443_s21   ;;  %s3660_s20 = sphi %s3779_s20, %s4442_s20   ;;  %s3656_s19 = sphi %s3777_s19, %s4441_s19   ;;  %s3652_s18 = sphi %s3775_s18, %s4440_s18  }
  0x15   : > { %s398_s23 = sshll.u32 %s3666_s22, 4  ;;  %p2759_p0 = scmp.ge.s32.totalorder %s3664_s21, 1  ;;  %s399_s23 = int_to_ptr.vmem [resolvable:$true] %s398_s23 }
  0x16   : > { %p4381_p1 = scmp.eq.s32.totalorder %s3796_s24, 0  ;;  %p386_p2 = scmp.lt.s32.totalorder %s3664_s21, 3 }
  0x17   : > { %s3667_s26 = smov [#allocation9]   ;;  %s3668_s29 = smov [#allocation12]  }
  0x18   : > { %p3801_p3 = pnand %p2759_p0, %p386_p2  ;;  %s428_s27 = sshll.u32 %s3667_s26, 4  ;;  %s3814_s27 = int_to_ptr.vmem [resolvable:$true] %s428_s27 }
  0x19   : > { %s3816_s30 = sshll.u32 %s3668_s29, 4  ;;  %s3385_s17 = scalar_lea.vmem %s399_s23, 256  ;;  %s458_s30 = int_to_ptr.vmem [resolvable:$true] %s3816_s30 }
  0x1a   : > { %s4401_s25 = scalar_select %p3801_p3, 1, 0 }
  0x1b   : > { %p3199_p5 = pneg %p3801_p3  ;;  %p3386_p8 = scmp.ne.s32.totalorder %s399_s23, %s3385_s17 }
  0x1c   : > { %p3393_p11 = scmp.lt.s32.totalorder %s399_s23, %s399_s23  ;;  %p3394_p12 = scmp.lt.s32.totalorder %s3385_s17, %s3385_s17 }
  0x1d   : > { %p3810_p6 = pnand %p3199_p5, %p4381_p1 }
  0x1e   : > { %p3395_p13 = por %p3394_p12, %p3393_p11 }
  0x1f   : > { %p3820_p7 = pneg %p3810_p6 }
  0x21   : > { %p3388_p9 = pnand %p3386_p8, %p3820_p7 }
  0x23   : > { %p3389_p10 = pneg %p3388_p9 }
  0x25   : > { %p3396_p0 = pnand %p3395_p13, %p3389_p10 }
  0x27   : > { %3399 = shalt.err (!%p3396_p0)
}
  0x28   : > { %s4377_s22 = smov 64   ;;  %s4379_s26 = smov 4  }
  0x29   : > { %s4404_s1 = sld [smem:[#allocation24_spill]]  ;;  %s3411_s14 = scalar_lea.vmem %s3814_s27, 32 }
  0x2a   : > { %p3412_p2 = scmp.ne.s32.totalorder %s3814_s27, %s3411_s14  ;;  %p3419_p9 = scmp.lt.s32.totalorder %s3814_s27, %s3814_s27 }
  0x2b   : > { %p3420_p10 = scmp.lt.s32.totalorder %s3411_s14, %s3411_s14 }
  0x2c   : > { %p3414_p5 = pnand %p3412_p2, %p3820_p7 }
  0x2d   : > { %p3421_p11 = por %p3420_p10, %p3419_p9 }
  0x2e   : > { %p3415_p8 = pneg %p3414_p5 }
  0x2f   : > { %3202 = dma.hbm_to_vmem [thread:$0]  (!%p3810_p6), %s4404_s1, 256, %s399_s23, [#allocation7], %s4377_s22, %s4377_s22, %s4379_s26  }
  0x30   : > { %p3422_p12 = pnand %p3421_p11, %p3415_p8 }
  0x32   : > { %3425 = shalt.err (!%p3422_p12)
}
  0x33   : > { %s4383_s17 = smov 16   ;;  %s4384_s12 = smov 1  }
  0x34   : > { %s4405_s5 = sld [smem:[#allocation26_spill]]  ;;  %s3437_s29 = scalar_lea.vmem %s458_s30, 32 }
  0x35   : > { %p3438_p13 = scmp.ne.s32.totalorder %s458_s30, %s3437_s29  ;;  %p3445_p5 = scmp.lt.s32.totalorder %s458_s30, %s458_s30 }
  0x36   : > { %p3446_p8 = scmp.lt.s32.totalorder %s3437_s29, %s3437_s29 }
  0x37   : > { %p3440_p0 = pnand %p3438_p13, %p3820_p7 }
  0x38   : > { %p3447_p9 = por %p3446_p8, %p3445_p5 }
  0x39   : > { %p3441_p2 = pneg %p3440_p0 }
  0x3a   : > { %3208 = dma.hbm_to_vmem [thread:$0]  (!%p3810_p6), %s4405_s5, 32, %s3814_s27, [#allocation10], %s4383_s17, %s4383_s17, %s4384_s12  }
  0x3b   : > { %p3448_p10 = pnand %p3447_p9, %p3441_p2 }
  0x3d   : > { %3451 = shalt.err (!%p3448_p10)
}
  0x3e   : > { %s4406_s8 = sld [smem:[#allocation28_spill]]  ;;  %s3673_s27 = smov [#allocation8]  }
  0x3f   : > { %s412_s15 = sshll.u32 %s3673_s27, 4  ;;  %s3674_s23 = smov [#allocation11]   ;;  %s413_s15 = int_to_ptr.vmem [resolvable:$true] %s412_s15 }
  0x40   : > { %s444_s26 = sshll.u32 %s3674_s23, 4  ;;  %s3463_s1 = scalar_lea.vmem %s413_s15, 16  ;;  %s445_s26 = int_to_ptr.vmem [resolvable:$true] %s444_s26 }
  0x41   : > { %p3464_p11 = scmp.ne.s32.totalorder %s413_s15, %s3463_s1  ;;  %s3470_s29 = scalar_lea.vmem %s413_s15, 32 }
  0x42   : > { %p3471_p0 = scmp.lt.s32.totalorder %s413_s15, %s413_s15  ;;  %p3472_p2 = scmp.lt.s32.totalorder %s3470_s29, %s3463_s1 }
  0x43   : > { %p3466_p12 = pnand %p3464_p11, %p3820_p7 }
  0x44   : > { %3214 = dma.hbm_to_vmem [thread:$0]  (!%p3810_p6), %s4406_s8, 32, %s458_s30, [#allocation13], %s4383_s17, %s4383_s17, %s4384_s12  }
  0x45   : > { %p3467_p13 = pneg %p3466_p12  ;;  %p3473_p5 = por %p3472_p2, %p3471_p0 }
  0x47   : > { %p3474_p8 = pnand %p3473_p5, %p3467_p13 }
  0x49   : > { %3477 = shalt.err (!%p3474_p8)
}
  0x4a   : > { %s4407_s2 = sld [smem:[#allocation25_spill]]  ;;  %s3489_s14 = scalar_lea.vmem %s445_s26, 512 }
  0x4b   : > { %p3490_p9 = scmp.ne.s32.totalorder %s445_s26, %s3489_s14  ;;  %p3497_p12 = scmp.lt.s32.totalorder %s445_s26, %s445_s26 }
  0x4c   : > { %p3498_p4 = scmp.lt.s32.totalorder %s3489_s14, %s3489_s14 }
  0x4d   : > { %p3492_p10 = pnand %p3490_p9, %p3820_p7 }
  0x4e   : > { %p3499_p1 = por %p3498_p4, %p3497_p12 }
  0x4f   : > { %p3493_p11 = pneg %p3492_p10 }
  0x50   : > { %3205 = dma.hbm_to_vmem [thread:$0]  (!%p3810_p6), %s4407_s2, 16, %s413_s15, [#allocation7]  }
  0x51   : > { %p3500_p3 = pnand %p3499_p1, %p3493_p11 }
  0x53   : > { %3503 = shalt.err (!%p3500_p3)
}
  0x54   : > { %s4408_s1 = smov 4   ;;  %s4409_s27 = smov 64  }
  0x55   : > { %s4410_s7 = sld [smem:[#allocation27_spill]]  ;;  %s3675_s15 = smov [#allocation14]  }
  0x56   : > { %s473_s22 = sshll.u32 %s3675_s15, 4  ;;  %s3676_s30 = smov [#allocation15]   ;;  %s474_s22 = int_to_ptr.vmem [resolvable:$true] %s473_s22 }
  0x57   : > { %s492_s17 = sshll.u32 %s3676_s30, 4  ;;  %s3515_s12 = scalar_lea.vmem %s474_s22, 224  ;;  %s493_s17 = int_to_ptr.vmem [resolvable:$true] %s492_s17 }
  0x58   : > { %p3516_p13 = scmp.ne.s32.totalorder %s474_s22, %s3515_s12  ;;  %p3523_p4 = scmp.lt.s32.totalorder %s474_s22, %s474_s22 }
  0x59   : > { %p3524_p0 = scmp.lt.s32.totalorder %s3515_s12, %s3515_s12 }
  0x5a   : > { %p3518_p1 = pnand %p3516_p13, %p3820_p7 }
  0x5b   : > { %3211 = dma.hbm_to_vmem [thread:$0]  (!%p3810_p6), %s4410_s7, 512, %s445_s26, [#allocation10], %s4409_s27, %s4409_s27, %s4408_s1  }
  0x5c   : > { %p3519_p3 = pneg %p3518_p1  ;;  %p3525_p2 = por %p3524_p0, %p3523_p4 }
  0x5e   : > { %p3526_p5 = pnand %p3525_p2, %p3519_p3 }
  0x60   : > { %3529 = shalt.err (!%p3526_p5)
}
  0x61   : > { %s4411_s14 = smov 1   ;;  %s4412_s23 = smov 16  }
  0x62   : > { %s4413_s10 = sld [smem:[#allocation29_spill]]  ;;  %s3541_s15 = scalar_lea.vmem %s493_s17, 256 }
  0x63   : > { %p3542_p8 = scmp.ne.s32.totalorder %s493_s17, %s3541_s15  ;;  %p3549_p11 = scmp.lt.s32.totalorder %s493_s17, %s493_s17 }
  0x64   : > { %p3550_p12 = scmp.lt.s32.totalorder %s3541_s15, %s3541_s15 }
  0x65   : > { %p3544_p9 = pnand %p3542_p8, %p3820_p7 }
  0x66   : > { %p3551_p13 = por %p3550_p12, %p3549_p11 }
  0x67   : > { %p3545_p10 = pneg %p3544_p9 }
  0x68   : > { %3217 = dma.hbm_to_vmem [thread:$0]  (!%p3810_p6), %s4413_s10, 224, %s474_s22, [#allocation13], %s4412_s23, %s4412_s23, %s4411_s14  }
  0x69   : > { %p3552_p1 = pnand %p3551_p13, %p3545_p10 }
  0x6b   : > { %3555 = shalt.err (!%p3552_p1)
}
  0x6c   : > { %s4414_s13 = sld [smem:[#allocation31_spill]]  ;;  %s2758_s28 = sadd.s32 4294967294, %s3664_s21  }
  0x6d   : > { %s3899_s16 = sadd.s32 1, %s3664_s21   ;;  %s42_s22 = sadd.s32 1, %s3660_s20 }
  0x6e   : > { %s39_s14 = ssub.s32 %s3664_s21, %s3899_s16  ;;  %p49_p7 = scmp.ne.s32.totalorder %s3660_s20, %s3656_s19 }
  0x6f   : > { %p40_p3 = scmp.eq.s32.totalorder %s39_s14, 0  ;;  %p50_p4 = scmp.eq.s32.totalorder %s3664_s21, 0 }
  0x70   : > { %p55_p0 = scmp.ne.s32.totalorder %s3656_s19, %s3652_s18  ;;  %p373_p2 = scmp.eq.s32.totalorder %s3796_s24, 1 }
  0x71   : > { %s3911_s23 = scalar_select %p40_p3, %s3660_s20, %s42_s22  }
  0x72   : > { %3220 = dma.hbm_to_vmem [thread:$0]  (!%p3810_p6), %s4414_s13, 256, %s493_s17, [#allocation16], %s4409_s27, %s4409_s27, %s4408_s1  }
  0x73   : > { %p51_p5 = por %p50_p4, %p49_p7  ;;  %p4415_p8 = scmp.eq.s32.totalorder %s3796_s24, 0 }
  0x74   : > { %p3919_p6 = por %p373_p2, %p49_p7  ;;  %p379_p10 = scmp.eq.s32.totalorder %s2758_s28, 1 }
  0x75   : > { %p3915_p9 = por %p4415_p8, %p55_p0  ;;  %p3236_p11 = scmp.lt.s32.totalorder %s3664_s21, 2 }
  0x76   : > { %s4417_s17 = scalar_select %p3919_p6, 1, 0 }
  0x77   : > { %s4416_s26 = scalar_select %p3915_p9, 1, 0 }
  0x78   : > { %s509_s1 = sand.u32 1, %s3660_s20   ;;  %p3925_p12 = por %p379_p10, %p55_p0 }
  0x79   : > { %s2768_s29 = sshll.u32 %s509_s1, 3  ;;  %s2769_s15 = sshll.u32 %s3664_s21, 7 }
  0x7a   : > { %s4418_s27 = scalar_select %p3925_p12, 1, 0 }
  0x7b   : > { %s3933_s22 = scalar_lea.hbm %s4360_s0, %s2769_s15  ;;  %s513_s14 = scalar_lea.vmem [#allocation3], %s2768_s29 }
  0x7c   : > { %s520_s2 = sshll.u32 %s513_s14, 4  ;;  %p3935_p13 = pnand %p3236_p11, %p51_p5  ;;  %s521_s2 = int_to_ptr.vmem [resolvable:$true] %s520_s2 }
  0x7d   : > { %s510_s5 = scalar_lea.sflag [#allocation4], %s509_s1  ;;  %s3556_s7 = scalar_lea.hbm %s3933_s22, 128 }
  0x7e   : > { %p3557_p1 = scmp.ne.s32.totalorder %s3933_s22, %s3556_s7  ;;  %p3558_p7 = pneg %p3935_p13 }
  0x7f   : > { %s3561_s30 = scalar_lea.hbm %s4360_s0, 256  ;;  %p3562_p0 = scmp.lt.s32.totalorder %s3933_s22, %s4360_s0 }
  0x80   : > { %p3559_p3 = pnand %p3558_p7, %p3557_p1  ;;  %p3563_p2 = scmp.lt.s32.totalorder %s3561_s30, %s3556_s7 }
  0x82   : > { %p3560_p4 = pneg %p3559_p3  ;;  %p3564_p5 = por %p3563_p2, %p3562_p0 }
  0x84   : > { %p3565_p8 = pnand %p3564_p5, %p3560_p4 }
  0x86   : > { %3568 = shalt.err (!%p3565_p8)
}
  0x87   : > { %s3569_s14 = scalar_lea.vmem %s521_s2, 128  ;;  %s3677_s1 = smov [#allocation3]  }
  0x88   : > { %p3570_p10 = scmp.ne.s32.totalorder %s521_s2, %s3569_s14  ;;  %s3574_s10 = sshll.u32 %s3677_s1, 4  ;;  %s3575_s10 = int_to_ptr.vmem [resolvable:$false] %s3574_s10 }
  0x89   : > { %s3576_s13 = scalar_lea.vmem %s3575_s10, 256  ;;  %p3577_p1 = scmp.lt.s32.totalorder %s521_s2, %s3575_s10 }
  0x8a   : > { %p3572_p11 = pnand %p3570_p10, %p3558_p7  ;;  %p3578_p3 = scmp.lt.s32.totalorder %s3576_s13, %s3569_s14 }
  0x8c   : > { %p3573_p12 = pneg %p3572_p11  ;;  %p3579_p6 = por %p3578_p3, %p3577_p1 }
  0x8e   : > { %p3580_p9 = pnand %p3579_p6, %p3573_p12 }
  0x90   : > { %3583 = shalt.err (!%p3580_p9)
}
  0x91   : > { %3224 = dma.hbm_to_vmem [thread:$0]  (!%p3935_p13), %s3933_s22, 128, %s521_s2, %s510_s5  }
  0x92   : > { %p4420_p4 = scmp.ne.s32.totalorder %s4401_s25, 0 }
  0x93   : > { %s3956_s7 = sand.u32 (!%p4420_p4), 1, %s3656_s19   ;;  %p4421_p6 = scmp.ne.s32.totalorder (!%p4420_p4), %s4416_s26, 0 }
  0x94   : > { %529 = sbr.rel (%p4420_p4) target bundleno = 6022 (0x1786), region = 80  ;;  %s4387_s8 = sshll.u32 (!%p4420_p4), %s3956_s7, 3 }
  0x95   : > { %s532_s10 = scalar_lea.sflag (!%p4420_p4), [#allocation4], %s3956_s7  ;;  %s535_s13 = scalar_lea.vmem (!%p4420_p4), [#allocation3], %s4387_s8 }
  0x99   : > { %3627 = dma.done.wait (%p4421_p6), %s532_s10, 128  }
  0x9a   : > { %3629 = vsyncadd (%p4421_p6), %s532_s10, 4294967168  ;;  %p4422_p9 = scmp.eq.s32.totalorder %s3796_s24, 0 }
  0x9c   : > { %3631 = dma.done.wait (%p4422_p9), [#allocation7], 272   ;;  %p4423_p12 = pmov %p4422_p9 }
  0x9d   : > { %p4424_p13 = pmov %p4422_p9 }
  0x9e   : > { %3633 = vsyncadd (%p4423_p12), [#allocation7], 4294967024 }
  0x9f   : > { %3635 = dma.done.wait (%p4424_p13), [#allocation10], 544   ;;  %p4425_p7 = pmov %p4422_p9 }
  0xa1   : > { %3637 = vsyncadd (%p4425_p7), [#allocation10], 4294966752  ;;  %p4426_p0 = pmov %p4425_p7 }
  0xa3   : > { %3639 = dma.done.wait (%p4426_p0), [#allocation13], 256   ;;  %p4427_p2 = pmov %p4426_p0 }
  0xa4   : > { %p4428_p5 = pmov %p4426_p0 }
  0xa5   : > { %3641 = vsyncadd (%p4427_p2), [#allocation13], 4294967040 }
  0xa6   : > { %3643 = dma.done.wait (%p4428_p5), [#allocation16], 256   ;;  %p4429_p8 = pmov %p4426_p0 }
  0xa7   : > { %v3678_v0 = vmov 0.0   ;;  %vm3679_vm0 = vmmov 0   ;;  %vm639_vm1 = vcmask 1044480   ;;  %v3304_v1 = vld [vmem:[#allocation6 + $0x8] sm:$0x1f]   ;;  %v3305_v3 = vld [vmem:[#allocation6] sm:$0xff]   ;;  %v683_v42 = vlaneseq }
  0xa8   : > { %3645 = vsyncadd (%p4429_p8), [#allocation16], 4294967040  ;;  %2959 = vmatprep.subr.bf16.mxu0 %v3678_v0  ;;  %2963 = vmatprep.mubr.msk.bf16.mxu0 %vm3679_vm0, %v3678_v0  ;;  %v641_v2 = vsel %vm639_vm1, %v3304_v1, 0  ;;  %v611_v4 = vld [vmem:[%s535_s13] sm:$0xff]  ;;  %vm635_vm2 = vcmask 211968   ;;  %v3307_v7 = vld [vmem:[%s4363_s3] sm:$0xff]  }
  0xa9   : > { %2967 = vmatprep.subr.bf16.mxu1 %v3678_v0  ;;  %2971 = vmatprep.mubr.msk.bf16.mxu1 %vm3679_vm0, %v3678_v0  ;;  %v3306_v5 = vld [vmem:[%s4363_s3 + $0x8] sm:$0xff]   ;;  %v612_v6 = vpack.c.bf16 %v611_v4, %v611_v4  ;;  %vm725_vm3 = vcmask 261120   ;;  %v3309_v16 = vld [vmem:[%s4364_s4] sm:$0xff]   ;;  %s3680_s30 = smov 120   ;;  %s3681_s29 = smov 96   ;;  %vm840_vm4 = vcmask 64512  }
  0xaa   : > { %2960 = vmatpush3.bf16.msra.mxu0 %v641_v2  ;;  %2968 = vmatpush3.bf16.msra.mxu1 %v3306_v5  ;;  %v3308_v8 = vld [vmem:[%s4364_s4 + $0x8] sm:$0xff]   ;;  %s3682_s14 = smov 80   ;;  %s3683_s1 = smov 88   ;;  %v684_v43 = vshrl.u32 %v683_v42, 7  ;;  %v686_v44 = vand.u32 127, %v683_v42  ;;  %vm906_vm6 = vcmask 1043456  }
  0xab   : > { %2961 = vmatprep.subr.bf16.mxu0 %v3678_v0  ;;  %2969 = vmatprep.subr.bf16.mxu1 %v3678_v0  ;;  %v2780_v9 = vld [vmem:[#allocation8] ss:$0 sm:$0xff]  ;;  %v2784_v17 = vld [vmem:[#allocation14] ss:$0 sm:$0xff]  ;;  %v2788_v24 = vld [vmem:[#allocation9] ss:$0 sm:$0xff] }
  0xac   : > { %s3684_s10 = smov 72   ;;  %s3685_s13 = smov 112   ;;  %vm687_vm5 = vcmp.gt.s32.totalorder %v686_v44, %v684_v43  ;;  %vm1067_vm7 = vcmask 130112   ;;  %vm1185_vm8 = vcmask 195712   ;;  %vm1303_vm9 = vcmask 261312  }
  0xad   : > { %s3686_s2 = smov 104   ;;  %v4056_v46 = vsel %vm687_vm5, -1e+30, %v3678_v0  ;;  %s3687_s5 = smov 56   ;;  %vm1508_vm10 = vcmask 523264  }
  0xae   : > { %2962 = vmatpush3.bf16.msra.mxu0 %v3305_v3  ;;  %2970 = vmatpush3.bf16.msra.mxu1 %v3307_v7  ;;  %s3688_s25 = smov 64   ;;  %s4389_s26 = smov 40  }
  0xaf   : > { %2975 = vmatprep.subr.bf16.mxu0 %v3678_v0  ;;  %2983 = vmatprep.subr.bf16.mxu1 %v3678_v0  ;;  %s4388_s22 = smov 48   ;;  %s3691_s28 = smov 8  }
  0xb0   : > { %s4390_s15 = smov 24   ;;  %p4437_p11 = scmp.ne.s32.totalorder %s4417_s17, 0 }
  0xb1   : > { %2964 = vmatmul.mubr.msk.bf16.vlgmr.msra.gmra.mxu0 %vm635_vm2, %v612_v6 }
  0xb2   : > { %2979 = vmatprep.mubr.msk.bf16.mxu0 %vm3679_vm0, %v3678_v0  ;;  %2976 = vmatpush3.bf16.msra.mxu0 %v3308_v8 }
  0xb3   : > { %2977 = vmatprep.subr.bf16.mxu0 %v3678_v0 }
  0xb6   : > { %2978 = vmatpush3.bf16.msra.mxu0 %v3309_v16 }
  0xb7   : > { %2989 = vmatprep.subr.bf16.mxu0 %v3678_v0 }
 0x171   : > { %v677_v10 = vpop.f32.mrf.mxu0 }
 0x172   : > { %v4004_v11 = vadd.f32 %v2780_v9, %v677_v10 }
 0x173   : > { %v2965_v12 = vpop.f32.mrf.mxu0 }
 0x174   : > { %v702_v13 = vpack.c.bf16 %v4004_v11, %v4004_v11 }
 0x175   : > { %v680_v14 = vpop.f32.mrf.mxu0 }
 0x176   : > { %2972 = vmatmul.mubr.msk.bf16.vlgmr.msra.gmra.mxu1 %vm725_vm3, %v702_v13 }
 0x177   : > { %v2966_v15 = vpop.f32.mrf.mxu0  ;;  %2985 = vmatprep.mubr.msk.bf16.mxu1 %vm3679_vm0, %v3678_v0 }
 0x236   : > { %v763_v18 = vpop.f32.mrf.mxu1 }
 0x237   : > { %v764_v19 = vadd.f32 %v2784_v17, %v763_v18 }
 0x238   : > { %v2973_v20 = vpop.f32.mrf.mxu1 }
 0x239   : > { %v769_v21 = vpack.c.bf16 %v764_v19, %v764_v19 }
 0x23a   : > { %v766_v22 = vpop.f32.mrf.mxu1 }
 0x23b   : > { %2980 = vmatmul.mubr.msk.bf16.vlgmr.msra.gmra.mxu0 %vm725_vm3, %v769_v21 }
 0x23c   : > { %v2974_v23 = vpop.f32.mrf.mxu1  ;;  %2991 = vmatprep.mubr.msk.bf16.mxu0 %vm3679_vm0, %v3678_v0 }
 0x2fb   : > { %v830_v25 = vpop.f32.mrf.mxu0 }
 0x2fc   : > { %v831_v26 = vadd.f32 %v2788_v24, %v830_v25 }
 0x2fd   : > { %v2981_v27 = vpop.f32.mrf.mxu0 }
 0x2fe   : > { %v4018_v28 = vpack.c.bf16 %v831_v26, %v831_v26 }
 0x2ff   : > { %v833_v29 = vpop.f32.mrf.mxu0 }
 0x300   : > { %951 = vrot.lane.b32.xlu1 %v4018_v28, %s3680_s30  ;;  %838 = vrot.lane.b32.xlu0 %v4018_v28, %s3681_s29 }
 0x301   : > { %v2982_v30 = vpop.f32.mrf.mxu0 }
 0x304   : > { %1071 = vrot.lane.b32.xlu1 %v4018_v28, %s3682_s14  ;;  %953 = vrot.lane.b32.xlu0 %v4018_v28, %s3683_s1 }
 0x308   : > { %1189 = vrot.lane.b32.xlu1 %v4018_v28, %s3684_s10  ;;  %1069 = vrot.lane.b32.xlu0 %v4018_v28, %s3685_s13 }
 0x30c   : > { %1187 = vrot.lane.b32.xlu0 %v4018_v28, %s3686_s2 }
 0x372   : > { %v839_v31 = vpop.permute.xlu0 %838  ;;  %v952_v34 = vpop.permute.xlu1 %951 }
 0x373   : > { %v845_v32 = vsel %vm840_vm4, %v839_v31, 0 }
 0x374   : > { %2984 = vmatpush3.bf16.xpose.msra.mxu1 %v845_v32 }
 0x375   : > { %2995 = vmatprep.subr.bf16.mxu1 %v3678_v0 }
 0x376   : > { %v954_v33 = vpop.permute.xlu0 %953  ;;  %v1072_v36 = vpop.permute.xlu1 %1071 }
 0x377   : > { %v959_v35 = vsel %vm840_vm4, %v954_v33, 0  ;;  %v1077_v37 = vsel %vm840_vm4, %v1072_v36, 0 }
 0x37a   : > { %v1190_v38 = vpop.permute.xlu1 %1189  ;;  %v1070_v39 = vpop.permute.xlu0 %1069 }
 0x37b   : > { %2986 = vmatmul.mubr.msk.bf16.vlgmr.msra.gmra.mxu1 %vm840_vm4, %v4018_v28  ;;  %v1195_v40 = vsel %vm840_vm4, %v1190_v38, 0 }
 0x37c   : > { %2996 = vmatpush3.bf16.xpose.msra.mxu1 %v959_v35  ;;  %2997 = vmatprep.mubr.msk.bf16.mxu1 %vm3679_vm0, %v3678_v0 }
 0x37d   : > { %3007 = vmatprep.subr.bf16.mxu1 %v3678_v0 }
 0x37e   : > { %v1188_v41 = vpop.permute.xlu0 %1187 }
 0x383   : > { %2998 = vmatmul.mubr.msk.bf16.vlgmr.msra.gmra.mxu1 %vm840_vm4, %v952_v34 }
 0x384   : > { %3008 = vmatpush3.bf16.xpose.msra.mxu1 %v1077_v37  ;;  %3009 = vmatprep.mubr.msk.bf16.mxu1 %vm3679_vm0, %v3678_v0 }
 0x385   : > { %3019 = vmatprep.subr.bf16.mxu1 %v3678_v0 }
 0x38b   : > { %3010 = vmatmul.mubr.msk.bf16.vlgmr.msra.gmra.mxu1 %vm840_vm4, %v1070_v39 }
 0x38c   : > { %3020 = vmatpush3.bf16.xpose.msra.mxu1 %v1195_v40  ;;  %3021 = vmatprep.mubr.msk.bf16.mxu1 %vm3679_vm0, %v3678_v0 }
 0x38d   : > { %3031 = vmatprep.subr.bf16.mxu1 %v3678_v0 }
 0x393   : > { %3022 = vmatmul.mubr.msk.bf16.vlgmr.msra.gmra.mxu1 %vm840_vm4, %v1188_v41 }
 0x394   : > { %3035 = vmatprep.mubr.msk.bf16.mxu1 %vm3679_vm0, %v3678_v0 }
 0x43b   : > { %v881_v45 = vpop.f32.mrf.mxu1 }
 0x43c   : > { %v887_v47 = vmul.f32 0.35355338, %v881_v45 }
 0x43d   : > { %v2987_v48 = vpop.f32.mrf.mxu1 }
 0x43e   : > { %v888_v49 = vadd.f32 %v887_v47, %v4056_v46 }
 0x43f   : > { %v884_v50 = vpop.f32.mrf.mxu1 }
 0x440   : > { %v889_v51 = vsel %vm840_vm4, %v888_v49, -inf }
 0x441   : > { %890 = vmax.xlane.f32.xlu1 %v889_v51  ;;  %v2988_v52 = vpop.f32.mrf.mxu1 }
 0x443   : > { %v995_v53 = vpop.f32.mrf.mxu1 }
 0x444   : > { %v1001_v54 = vmul.f32 0.35355338, %v995_v53 }
 0x445   : > { %v2999_v55 = vpop.f32.mrf.mxu1 }
 0x446   : > { %v1002_v56 = vadd.f32 %v1001_v54, %v4056_v46 }
 0x447   : > { %v998_v57 = vpop.f32.mrf.mxu1 }
 0x448   : > { %v1003_v58 = vsel %vm840_vm4, %v1002_v56, -inf }
 0x449   : > { %1004 = vmax.xlane.f32.xlu0 %v1003_v58  ;;  %v3000_v59 = vpop.f32.mrf.mxu1 }
 0x44b   : > { %v1113_v60 = vpop.f32.mrf.mxu1 }
 0x44c   : > { %v1119_v61 = vmul.f32 0.35355338, %v1113_v60 }
 0x44d   : > { %v3011_v62 = vpop.f32.mrf.mxu1 }
 0x44e   : > { %v1120_v63 = vadd.f32 %v1119_v61, %v4056_v46 }
 0x44f   : > { %v1116_v1 = vpop.f32.mrf.mxu1 }
 0x450   : > { %v1121_v2 = vsel %vm840_vm4, %v1120_v63, -inf }
 0x451   : > { %1122 = vmax.xlane.f32.xlu0 %v1121_v2  ;;  %v3012_v3 = vpop.f32.mrf.mxu1  ;;  %v3310_v2 = vld [vmem:[%s4366_s6 + $0x8] sm:$0xff]  }
 0x452   : > { %3032 = vmatpush3.bf16.msra.mxu1 %v3310_v2 }
 0x453   : > { %v1231_v4 = vpop.f32.mrf.mxu1  ;;  %3033 = vmatprep.subr.bf16.mxu1 %v3678_v0 }
 0x454   : > { %v1237_v5 = vmul.f32 0.35355338, %v1231_v4  ;;  %v3311_v4 = vld [vmem:[%s4366_s6] sm:$0xff]  }
 0x455   : > { %v3023_v6 = vpop.f32.mrf.mxu1 }
 0x456   : > { %v1238_v7 = vadd.f32 %v1237_v5, %v4056_v46  ;;  %3034 = vmatpush3.bf16.msra.mxu1 %v3311_v4 }
 0x457   : > { %v1234_v8 = vpop.f32.mrf.mxu1  ;;  %3047 = vmatprep.subr.bf16.mxu1 %v3678_v0 }
 0x458   : > { %v1239_v9 = vsel %vm840_vm4, %v1238_v7, -inf }
 0x459   : > { %1240 = vmax.xlane.f32.xlu1 %v1239_v9  ;;  %v3024_v10 = vpop.f32.mrf.mxu1 }
 0x4ca   : > { %v891_v12 = vpop.xlane.xlu1 %890 }
 0x4cb   : > { %v892_v13 = vsub.f32 %v888_v49, %v891_v12 }
 0x4cd   : > { %v893_v14 = vmul.f32 1.442695, %v892_v13 }
 0x4cf   : > { %3334 = vpow2.f32 %v893_v14 }
 0x4d2   : > { %v1005_v15 = vpop.xlane.xlu0 %1004 }
 0x4d3   : > { %v1006_v16 = vsub.f32 %v1002_v56, %v1005_v15 }
 0x4d5   : > { %v1007_v17 = vmul.f32 1.442695, %v1006_v16 }
 0x4d7   : > { %3336 = vpow2.f32 %v1007_v17 }
 0x4da   : > { %v1123_v18 = vpop.xlane.xlu0 %1122 }
 0x4db   : > { %v1124_v19 = vsub.f32 %v1120_v63, %v1123_v18  ;;  %v2800_v18 = vld [vmem:[#allocation14 + $0x1] ss:$0 sm:$0xff] }
 0x4dc   : > { %v3335_v20 = vpop.eup %3334 }
 0x4dd   : > { %v1125_v21 = vmul.f32 1.442695, %v1124_v19  ;;  %v895_v22 = vsel %vm840_vm4, %v3335_v20, 0.0 }
 0x4de   : > { %896 = vadd.xlane.f32.xlu0 %v895_v22 }
 0x4df   : > { %3338 = vpow2.f32 %v1125_v21 }
 0x4e2   : > { %v1241_v27 = vpop.xlane.xlu1 %1240 }
 0x4e3   : > { %v1242_v29 = vsub.f32 %v1238_v7, %v1241_v27 }
 0x4e4   : > { %v3337_v23 = vpop.eup %3336 }
 0x4e5   : > { %v1009_v24 = vsel %vm840_vm4, %v3337_v23, 0.0  ;;  %v1243_v30 = vmul.f32 1.442695, %v1242_v29 }
 0x4e6   : > { %1010 = vadd.xlane.f32.xlu1 %v1009_v24 }
 0x4e7   : > { %3340 = vpow2.f32 %v1243_v30 }
 0x4ec   : > { %v3339_v25 = vpop.eup %3338 }
 0x4ed   : > { %v1127_v26 = vsel %vm840_vm4, %v3339_v25, 0.0 }
 0x4ee   : > { %1128 = vadd.xlane.f32.xlu0 %v1127_v26 }
 0x4f4   : > { %v3341_v31 = vpop.eup %3340 }
 0x4f5   : > { %v1245_v32 = vsel %vm840_vm4, %v3341_v31, 0.0 }
 0x4f7   : > { %1015 = vrot.lane.b32.xlu1 %v4018_v28, %s3687_s5 }
 0x504   : > { %901 = vrot.lane.b32.xlu0 %v4018_v28, %s3688_s25 }
 0x508   : > { %1251 = vrot.lane.b32.xlu0 %v4018_v28, %s4389_s26  ;;  %s3692_s26 = smov 16  }
 0x51b   : > { %1246 = vadd.xlane.f32.xlu1 %v1245_v32  ;;  %v3312_v32 = vld [vmem:[#allocation11 + $0x8] sm:$0xff]  }
 0x52c   : > { %1133 = vrot.lane.b32.xlu1 %v4018_v28, %s4388_s22 }
 0x567   : > { %v897_v33 = vpop.xlane.xlu0 %896 }
 0x568   : > { %3342 = vrcp.f32 %v897_v33  ;;  %v3313_v33 = vld [vmem:[#allocation11] sm:$0xff]  }
 0x56f   : > { %v1011_v34 = vpop.xlane.xlu1 %1010 }
 0x570   : > { %3344 = vrcp.f32 %v1011_v34  ;;  %v3315_v34 = vld [vmem:[%s4369_s9 + $0x10] sm:$0xff]  }
 0x573   : > { %v1016_v40 = vpop.permute.xlu1 %1015 }
 0x574   : > { %v1021_v43 = vsel %vm906_vm6, %v1016_v40, 0 }
 0x575   : > { %v3343_v35 = vpop.eup %3342 }
 0x576   : > { %v899_v37 = vmul.f32 %v3343_v35, %v3335_v20 }
 0x577   : > { %v1129_v36 = vpop.xlane.xlu0 %1128 }
 0x578   : > { %v900_v41 = vpack.c.bf16 %v899_v37, %v899_v37  ;;  %3346 = vrcp.f32 %v1129_v36 }
 0x57b   : > { %v902_v38 = vpop.permute.xlu0 %901 }
 0x57c   : > { %v908_v39 = vsel %vm906_vm6, %v902_v38, 0 }
 0x57d   : > { %2990 = vmatpush3.bf16.msra.mxu0 %v908_v39  ;;  %v3345_v42 = vpop.eup %3344  ;;  %v2804_v39 = vld [vmem:[#allocation14 + $0x3] ss:$0 sm:$0xff] }
 0x57e   : > { %3001 = vmatprep.subr.bf16.mxu0 %v3678_v0  ;;  %v1013_v28 = vmul.f32 %v3345_v42, %v3337_v23 }
 0x57f   : > { %v1252_v51 = vpop.permute.xlu0 %1251 }
 0x580   : > { %2992 = vmatmul.mubr.msk.bf16.vlgmr.msra.gmra.mxu0 %vm840_vm4, %v900_v41  ;;  %v1014_v44 = vpack.c.bf16 %v1013_v28, %v1013_v28  ;;  %v1257_v53 = vsel %vm906_vm6, %v1252_v51, 0  ;;  %v2805_v41 = vld [vmem:[#allocation14 + $0x4] ss:$0 sm:$0xff] }
 0x581   : > { %3002 = vmatpush3.bf16.msra.mxu0 %v1021_v43  ;;  %3003 = vmatprep.mubr.msk.bf16.mxu0 %vm3679_vm0, %v3678_v0 }
 0x582   : > { %3013 = vmatprep.subr.bf16.mxu0 %v3678_v0 }
 0x585   : > { %v3347_v45 = vpop.eup %3346 }
 0x586   : > { %v1131_v48 = vmul.f32 %v3347_v45, %v3339_v25  ;;  %v3317_v45 = vld [vmem:[%s4369_s9] sm:$0xff]  }
 0x588   : > { %3004 = vmatmul.mubr.msk.bf16.vlgmr.msra.gmra.mxu0 %vm840_vm4, %v1014_v44  ;;  %v1132_v52 = vpack.c.bf16 %v1131_v48, %v1131_v48  ;;  %v3316_v44 = vld [vmem:[%s4369_s9 + $0x8] sm:$0xff]  }
 0x589   : > { %3015 = vmatprep.mubr.msk.bf16.mxu0 %vm3679_vm0, %v3678_v0 }
 0x5a4   : > { %v1247_v47 = vpop.xlane.xlu1 %1246 }
 0x5a5   : > { %3348 = vrcp.f32 %v1247_v47  ;;  %v2806_v47 = vld [vmem:[#allocation12] ss:$0 sm:$0xff] }
 0x5a8   : > { %v1134_v49 = vpop.permute.xlu1 %1133 }
 0x5a9   : > { %v1139_v50 = vsel %vm906_vm6, %v1134_v49, 0 }
 0x5aa   : > { %3014 = vmatpush3.bf16.msra.mxu0 %v1139_v50 }
 0x5ab   : > { %3025 = vmatprep.subr.bf16.mxu0 %v3678_v0 }
 0x5ad   : > { %3016 = vmatmul.mubr.msk.bf16.vlgmr.msra.gmra.mxu0 %vm840_vm4, %v1132_v52 }
 0x5ae   : > { %3026 = vmatpush3.bf16.msra.mxu0 %v1257_v53  ;;  %3027 = vmatprep.mubr.msk.bf16.mxu0 %vm3679_vm0, %v3678_v0 }
 0x5af   : > { %3039 = vmatprep.subr.bf16.mxu0 %v3678_v0 }
 0x5b2   : > { %v3349_v54 = vpop.eup %3348 }
 0x5b3   : > { %v1249_v55 = vmul.f32 %v3349_v54, %v3341_v31 }
 0x5b5   : > { %v1250_v56 = vpack.c.bf16 %v1249_v55, %v1249_v55  ;;  %v2810_v55 = vld [vmem:[#allocation14 + $0x2] ss:$0 sm:$0xff] }
 0x5b7   : > { %3028 = vmatmul.mubr.msk.bf16.vlgmr.msra.gmra.mxu0 %vm840_vm4, %v1250_v56 }
 0x5b8   : > { %3043 = vmatprep.mubr.msk.bf16.mxu0 %vm3679_vm0, %v3678_v0  ;;  %3040 = vmatpush3.bf16.msra.mxu0 %v3312_v32 }
 0x5b9   : > { %3041 = vmatprep.subr.bf16.mxu0 %v3678_v0 }
 0x5bc   : > { %3042 = vmatpush3.bf16.msra.mxu0 %v3313_v33 }
 0x5bd   : > { %3059 = vmatprep.subr.bf16.mxu0 %v3678_v0 }
 0x640   : > { %v944_v57 = vpop.f32.mrf.mxu0 }
 0x641   : > { %950 = vst.msk [vmem:[#allocation2] sm:$0xff] %vm840_vm4, %v944_v57 }
 0x642   : > { %v2993_v58 = vpop.f32.mrf.mxu0 }
 0x644   : > { %v947_v59 = vpop.f32.mrf.mxu0 }
 0x646   : > { %v2994_v60 = vpop.f32.mrf.mxu0 }
 0x648   : > { %v1057_v61 = vpop.f32.mrf.mxu0 }
 0x649   : > { %1064 = vrot.lane.b32.xlu1 %v1057_v61, %s3691_s28 }
 0x64a   : > { %v3005_v62 = vpop.f32.mrf.mxu0 }
 0x64c   : > { %v1060_v63 = vpop.f32.mrf.mxu0 }
 0x64e   : > { %v3006_v1 = vpop.f32.mrf.mxu0 }
 0x66d   : > { %v1175_v3 = vpop.f32.mrf.mxu0 }
 0x66e   : > { %1182 = vrot.lane.b32.xlu0 %v1175_v3, %s3692_s26 }
 0x66f   : > { %v3017_v5 = vpop.f32.mrf.mxu0 }
 0x670   : > { %v3318_v5 = vld [vmem:[%s4363_s3 + $0x18] sm:$0xff]  }
 0x671   : > { %v1178_v6 = vpop.f32.mrf.mxu0 }
 0x672   : > { %v3319_v6 = vld [vmem:[%s4363_s3 + $0x10] sm:$0xff]  }
 0x673   : > { %v3018_v7 = vpop.f32.mrf.mxu0 }
 0x677   : > { %v1293_v8 = vpop.f32.mrf.mxu0 }
 0x678   : > { %1300 = vrot.lane.b32.xlu1 %v1293_v8, %s4390_s15  ;;  %s4435_s15 = sshll.u32 %s3956_s7, 3 }
 0x679   : > { %v3029_v9 = vpop.f32.mrf.mxu0  ;;  %s609_s8 = scalar_lea.vmem [#allocation17], %s4435_s15 }
 0x67a   : > { %s2621_s22 = sshll.u32 %s609_s8, 4  ;;  %s4319_s22 = int_to_ptr.vmem [resolvable:$true] %s2621_s22 }
 0x67b   : > { %v1296_v10 = vpop.f32.mrf.mxu0 }
 0x67d   : > { %v3030_v12 = vpop.f32.mrf.mxu0 }
 0x67e   : > { %v2816_v12 = vld [vmem:[#allocation14 + $0x5] ss:$0 sm:$0xff] }
 0x6bb   : > { %v1065_v13 = vpop.permute.xlu1 %1064 }
 0x6bc   : > { %1068 = vst.msk [vmem:[#allocation2] sm:$0xff] %vm1067_vm7, %v1065_v13 }
 0x6e0   : > { %v1183_v14 = vpop.permute.xlu0 %1182 }
 0x6e1   : > { %1186 = vst.msk [vmem:[#allocation2] sm:$0xff] %vm1185_vm8, %v1183_v14  ;;  %v2817_v14 = vld [vmem:[#allocation14 + $0x6] ss:$0 sm:$0xff] }
 0x6ea   : > { %v1301_v15 = vpop.permute.xlu1 %1300 }
 0x6eb   : > { %1304 = vst.msk [vmem:[#allocation2] sm:$0xff] %vm1303_vm9, %v1301_v15 }
 0x6f2   : > { %v1305_v16 = vld [vmem:[#allocation2] sm:$0xff] }
 0x6f3   : > { %v1306_v17 = vpack.c.bf16 %v1305_v16, %v1305_v16 }
 0x6f5   : > { %3036 = vmatmul.mubr.msk.bf16.vlgmr.msra.gmra.mxu1 %vm725_vm3, %v1306_v17  ;;  %v3320_v17 = vld [vmem:[%s4364_s4 + $0x18] sm:$0xff]  }
 0x6f6   : > { %3055 = vmatprep.mubr.msk.bf16.mxu1 %vm3679_vm0, %v3678_v0 }
 0x7b5   : > { %v1366_v19 = vpop.f32.mrf.mxu1 }
 0x7b6   : > { %v1367_v20 = vadd.f32 %v2800_v18, %v1366_v19  ;;  %v3321_v19 = vld [vmem:[%s4364_s4 + $0x10] sm:$0xff]  }
 0x7b7   : > { %v3037_v21 = vpop.f32.mrf.mxu1 }
 0x7b8   : > { %v1372_v22 = vadd.f32 %v1367_v20, %v4004_v11  ;;  %v3314_v11 = vld [vmem:[%s4369_s9 + $0x18] sm:$0xff]   ;;  %v2822_v20 = vld [vmem:[#allocation14 + $0x7] ss:$0 sm:$0xff] }
 0x7b9   : > { %v1369_v23 = vpop.f32.mrf.mxu1  ;;  %3048 = vmatpush3.bf16.msra.mxu1 %v3314_v11 }
 0x7ba   : > { %v1373_v24 = vsel %vm725_vm3, %v1372_v22, 0.0  ;;  %3049 = vmatprep.subr.bf16.mxu1 %v3678_v0 }
 0x7bb   : > { %1374 = vadd.xlane.f32.xlu0 %v1373_v24  ;;  %v3038_v25 = vpop.f32.mrf.mxu1 }
 0x7bd   : > { %3050 = vmatpush3.bf16.msra.mxu1 %v3315_v34 }
 0x7be   : > { %3051 = vmatprep.subr.bf16.mxu1 %v3678_v0 }
 0x7c1   : > { %3052 = vmatpush3.bf16.msra.mxu1 %v3316_v44 }
 0x7c2   : > { %3053 = vmatprep.subr.bf16.mxu1 %v3678_v0 }
 0x7c5   : > { %3054 = vmatpush3.bf16.msra.mxu1 %v3317_v45 }
 0x7c6   : > { %3075 = vmatprep.subr.bf16.mxu1 %v3678_v0 }
 0x844   : > { %v1375_v26 = vpop.xlane.xlu0 %1374 }
 0x845   : > { %v1377_v27 = vmul.f32 0.03125, %v1375_v26 }
 0x847   : > { %v1378_v29 = vsub.f32 %v1372_v22, %v1377_v27  ;;  %v2830_v27 = vld [vmem:[#allocation9 + $0x1] ss:$0 sm:$0xff] }
 0x849   : > { %v1379_v30 = vmul.f32 %v1378_v29, %v1378_v29 }
 0x84b   : > { %v1380_v31 = vsel %vm725_vm3, %v1379_v30, 0.0 }
 0x84c   : > { %1381 = vadd.xlane.f32.xlu1 %v1380_v31 }
 0x8d5   : > { %v1382_v35 = vpop.xlane.xlu1 %1381 }
 0x8d6   : > { %v1383_v36 = vmul.f32 0.03125, %v1382_v35 }
 0x8d8   : > { %v1384_v37 = vadd.f32 1e-05, %v1383_v36 }
 0x8da   : > { %3350 = vrsqrt.f32 %v1384_v37 }
 0x8e7   : > { %v3351_v38 = vpop.eup %3350 }
 0x8e8   : > { %v1386_v40 = vmul.f32 %v3351_v38, %v1378_v29 }
 0x8ea   : > { %v1393_v42 = vmul.f32 %v2804_v39, %v1386_v40 }
 0x8ec   : > { %v1400_v43 = vadd.f32 %v2805_v41, %v1393_v42 }
 0x8ee   : > { %v1401_v28 = vpack.c.bf16 %v1400_v43, %v1400_v43 }
 0x8f0   : > { %3044 = vmatmul.mubr.msk.bf16.vlgmr.msra.gmra.mxu0 %vm725_vm3, %v1401_v28 }
 0x8f1   : > { %3063 = vmatprep.mubr.msk.bf16.mxu0 %vm3679_vm0, %v3678_v0  ;;  %3060 = vmatpush3.bf16.msra.mxu0 %v3318_v5 }
 0x8f2   : > { %3061 = vmatprep.subr.bf16.mxu0 %v3678_v0 }
 0x8f5   : > { %3062 = vmatpush3.bf16.msra.mxu0 %v3319_v6 }
 0x8f6   : > { %3067 = vmatprep.subr.bf16.mxu0 %v3678_v0 }
 0x9b0   : > { %v1462_v48 = vpop.f32.mrf.mxu0 }
 0x9b1   : > { %v1463_v49 = vadd.f32 %v2806_v47, %v1462_v48 }
 0x9b2   : > { %v3045_v50 = vpop.f32.mrf.mxu0 }
 0x9b3   : > { %v1468_v51 = vmax.f32 %v1463_v49, 0.0 }
 0x9b4   : > { %v1465_v52 = vpop.f32.mrf.mxu0 }
 0x9b5   : > { %v1469_v53 = vpack.c.bf16 %v1468_v51, %v1468_v51 }
 0x9b6   : > { %v3046_v54 = vpop.f32.mrf.mxu0 }
 0x9b7   : > { %3056 = vmatmul.mubr.msk.bf16.vlgmr.msra.gmra.mxu1 %vm1508_vm10, %v1469_v53 }
 0x9b8   : > { %3077 = vmatprep.mubr.msk.bf16.mxu1 %vm3679_vm0, %v3678_v0 }
 0xa77   : > { %v1546_v56 = vpop.f32.mrf.mxu1 }
 0xa78   : > { %v1547_v57 = vadd.f32 %v2810_v55, %v1546_v56 }
 0xa79   : > { %v3057_v58 = vpop.f32.mrf.mxu1 }
 0xa7a   : > { %v1552_v59 = vadd.f32 %v1547_v57, %v1400_v43 }
 0xa7b   : > { %v1549_v60 = vpop.f32.mrf.mxu1 }
 0xa7c   : > { %v1553_v61 = vsel %vm725_vm3, %v1552_v59, 0.0 }
 0xa7d   : > { %1554 = vadd.xlane.f32.xlu0 %v1553_v61  ;;  %v3058_v62 = vpop.f32.mrf.mxu1 }
 0xb06   : > { %v1555_v63 = vpop.xlane.xlu0 %1554 }
 0xb07   : > { %v1556_v1 = vmul.f32 0.03125, %v1555_v63 }
 0xb09   : > { %v1557_v2 = vsub.f32 %v1552_v59, %v1556_v1 }
 0xb0b   : > { %v1558_v3 = vmul.f32 %v1557_v2, %v1557_v2 }
 0xb0d   : > { %v1559_v4 = vsel %vm725_vm3, %v1558_v3, 0.0 }
 0xb0e   : > { %1560 = vadd.xlane.f32.xlu0 %v1559_v4 }
 0xb97   : > { %v1561_v7 = vpop.xlane.xlu0 %1560 }
 0xb98   : > { %v1562_v8 = vmul.f32 0.03125, %v1561_v7 }
 0xb9a   : > { %v1563_v9 = vadd.f32 1e-05, %v1562_v8 }
 0xb9c   : > { %3352 = vrsqrt.f32 %v1563_v9 }
 0xba9   : > { %v3353_v10 = vpop.eup %3352 }
 0xbaa   : > { %v1565_v13 = vmul.f32 %v3353_v10, %v1557_v2 }
 0xbac   : > { %v1572_v15 = vmul.f32 %v2816_v12, %v1565_v13 }
 0xbae   : > { %v4153_v16 = vadd.f32 %v2817_v14, %v1572_v15 }
 0xbb0   : > { %v1594_v18 = vpack.c.bf16 %v4153_v16, %v4153_v16 }
 0xbb2   : > { %3064 = vmatmul.mubr.msk.bf16.vlgmr.msra.gmra.mxu0 %vm725_vm3, %v1594_v18 }
 0xbb3   : > { %3068 = vmatpush3.bf16.msra.mxu0 %v3320_v17  ;;  %3071 = vmatprep.mubr.msk.bf16.mxu0 %vm3679_vm0, %v3678_v0 }
 0xbb4   : > { %3069 = vmatprep.subr.bf16.mxu0 %v3678_v0 }
 0xbb7   : > { %3070 = vmatpush3.bf16.msra.mxu0 %v3321_v19 }
 0xbb8   : > { %3081 = vmatprep.subr.bf16.mxu0 %v3678_v0 }
 0xc72   : > { %v1655_v21 = vpop.f32.mrf.mxu0 }
 0xc73   : > { %v1656_v22 = vadd.f32 %v2822_v20, %v1655_v21 }
 0xc74   : > { %v3065_v23 = vpop.f32.mrf.mxu0 }
 0xc75   : > { %v1661_v24 = vpack.c.bf16 %v1656_v22, %v1656_v22 }
 0xc76   : > { %v1658_v25 = vpop.f32.mrf.mxu0 }
 0xc77   : > { %3072 = vmatmul.mubr.msk.bf16.vlgmr.msra.gmra.mxu0 %vm725_vm3, %v1661_v24 }
 0xc78   : > { %v3066_v26 = vpop.f32.mrf.mxu0  ;;  %3083 = vmatprep.mubr.msk.bf16.mxu0 %vm3679_vm0, %v3678_v0 }
 0xd37   : > { %v1724_v29 = vpop.f32.mrf.mxu0 }
 0xd38   : > { %v1725_v30 = vadd.f32 %v2830_v27, %v1724_v29 }
 0xd39   : > { %v3073_v31 = vpop.f32.mrf.mxu0 }
 0xd3a   : > { %v4171_v32 = vpack.c.bf16 %v1725_v30, %v1725_v30 }
 0xd3b   : > { %v1727_v33 = vpop.f32.mrf.mxu0 }
 0xd3c   : > { %1845 = vrot.lane.b32.xlu0 %v4171_v32, %s3683_s1  ;;  %1732 = vrot.lane.b32.xlu1 %v4171_v32, %s3681_s29  ;;  %s4431_s29 = smov 48   ;;  %s2608_s1 = scalar_lea.sflag [#allocation5], %s3956_s7 }
 0xd3d   : > { %v3074_v11 = vpop.f32.mrf.mxu0 }
 0xd40   : > { %1960 = vrot.lane.b32.xlu0 %v4171_v32, %s3685_s13  ;;  %1843 = vrot.lane.b32.xlu1 %v4171_v32, %s3680_s30  ;;  %s4430_s30 = smov 40  }
 0xd44   : > { %2077 = vrot.lane.b32.xlu0 %v4171_v32, %s3686_s2  ;;  %1962 = vrot.lane.b32.xlu1 %v4171_v32, %s3682_s14  ;;  %s4432_s2 = smov 24  }
 0xd48   : > { %2079 = vrot.lane.b32.xlu1 %v4171_v32, %s3684_s10  ;;  %s3694_s10 = smov [#allocation17]  }
 0xd49   : > { %s3588_s13 = sshll.u32 %s3694_s10, 4  ;;  %s3589_s13 = int_to_ptr.vmem [resolvable:$false] %s3588_s13 }
 0xd4a   : > { %p3591_p4 = scmp.lt.s32.totalorder %s4319_s22, %s3589_s13 }
 0xdae   : > { %v1733_v34 = vpop.permute.xlu1 %1732  ;;  %v1846_v36 = vpop.permute.xlu0 %1845 }
 0xdaf   : > { %v1738_v35 = vsel %vm840_vm4, %v1733_v34, 0  ;;  %v1851_v38 = vsel %vm840_vm4, %v1846_v36, 0 }
 0xdb0   : > { %3076 = vmatpush3.bf16.xpose.msra.mxu1 %v1738_v35 }
 0xdb1   : > { %3087 = vmatprep.subr.bf16.mxu1 %v3678_v0 }
 0xdb2   : > { %v1844_v37 = vpop.permute.xlu1 %1843  ;;  %v1961_v42 = vpop.permute.xlu0 %1960 }
 0xdb6   : > { %v1963_v39 = vpop.permute.xlu1 %1962  ;;  %v2078_v28 = vpop.permute.xlu0 %2077 }
 0xdb7   : > { %3078 = vmatmul.mubr.msk.bf16.vlgmr.msra.gmra.mxu1 %vm840_vm4, %v4171_v32  ;;  %v1968_v40 = vsel %vm840_vm4, %v1963_v39, 0 }
 0xdb8   : > { %3088 = vmatpush3.bf16.xpose.msra.mxu1 %v1851_v38  ;;  %3089 = vmatprep.mubr.msk.bf16.mxu1 %vm3679_vm0, %v3678_v0 }
 0xdb9   : > { %3099 = vmatprep.subr.bf16.mxu1 %v3678_v0 }
 0xdba   : > { %v2080_v41 = vpop.permute.xlu1 %2079 }
 0xdbb   : > { %v2085_v43 = vsel %vm840_vm4, %v2080_v41, 0 }
 0xdbf   : > { %3090 = vmatmul.mubr.msk.bf16.vlgmr.msra.gmra.mxu1 %vm840_vm4, %v1844_v37 }
 0xdc0   : > { %3100 = vmatpush3.bf16.xpose.msra.mxu1 %v1968_v40  ;;  %3101 = vmatprep.mubr.msk.bf16.mxu1 %vm3679_vm0, %v3678_v0 }
 0xdc1   : > { %3111 = vmatprep.subr.bf16.mxu1 %v3678_v0 }
 0xdc7   : > { %3102 = vmatmul.mubr.msk.bf16.vlgmr.msra.gmra.mxu1 %vm840_vm4, %v1961_v42 }
 0xdc8   : > { %3112 = vmatpush3.bf16.xpose.msra.mxu1 %v2085_v43  ;;  %3113 = vmatprep.mubr.msk.bf16.mxu1 %vm3679_vm0, %v3678_v0 }
 0xdc9   : > { %3123 = vmatprep.subr.bf16.mxu1 %v3678_v0 }
 0xdcf   : > { %3114 = vmatmul.mubr.msk.bf16.vlgmr.msra.gmra.mxu1 %vm840_vm4, %v2078_v28 }
 0xdd0   : > { %3127 = vmatprep.mubr.msk.bf16.mxu1 %vm3679_vm0, %v3678_v0 }
 0xe77   : > { %v1774_v44 = vpop.f32.mrf.mxu1 }
 0xe78   : > { %v1780_v45 = vmul.f32 0.35355338, %v1774_v44 }
 0xe79   : > { %v3079_v47 = vpop.f32.mrf.mxu1 }
 0xe7a   : > { %v1781_v48 = vadd.f32 %v1780_v45, %v4056_v46 }
 0xe7b   : > { %v1777_v49 = vpop.f32.mrf.mxu1 }
 0xe7c   : > { %v1782_v50 = vsel %vm840_vm4, %v1781_v48, -inf }
 0xe7d   : > { %1783 = vmax.xlane.f32.xlu1 %v1782_v50  ;;  %v3080_v51 = vpop.f32.mrf.mxu1 }
 0xe7f   : > { %v1887_v52 = vpop.f32.mrf.mxu1 }
 0xe80   : > { %v1893_v53 = vmul.f32 0.35355338, %v1887_v52 }
 0xe81   : > { %v3091_v54 = vpop.f32.mrf.mxu1 }
 0xe82   : > { %v1894_v55 = vadd.f32 %v1893_v53, %v4056_v46 }
 0xe83   : > { %v1890_v56 = vpop.f32.mrf.mxu1 }
 0xe84   : > { %v1895_v57 = vsel %vm840_vm4, %v1894_v55, -inf }
 0xe85   : > { %1896 = vmax.xlane.f32.xlu0 %v1895_v57  ;;  %v3092_v58 = vpop.f32.mrf.mxu1 }
 0xe87   : > { %v2004_v59 = vpop.f32.mrf.mxu1 }
 0xe88   : > { %v2010_v60 = vmul.f32 0.35355338, %v2004_v59 }
 0xe89   : > { %v3103_v61 = vpop.f32.mrf.mxu1 }
 0xe8a   : > { %v2011_v62 = vadd.f32 %v2010_v60, %v4056_v46 }
 0xe8b   : > { %v2007_v63 = vpop.f32.mrf.mxu1 }
 0xe8c   : > { %v2012_v1 = vsel %vm840_vm4, %v2011_v62, -inf  ;;  %v3322_v63 = vld [vmem:[%s4366_s6 + $0x18] sm:$0xff]  }
 0xe8d   : > { %2013 = vmax.xlane.f32.xlu0 %v2012_v1  ;;  %v3104_v2 = vpop.f32.mrf.mxu1  ;;  %3124 = vmatpush3.bf16.msra.mxu1 %v3322_v63 }
 0xe8e   : > { %v3323_v2 = vld [vmem:[%s4366_s6 + $0x10] sm:$0xff]   ;;  %3125 = vmatprep.subr.bf16.mxu1 %v3678_v0 }
 0xe8f   : > { %v2121_v3 = vpop.f32.mrf.mxu1 }
 0xe90   : > { %v2127_v4 = vmul.f32 0.35355338, %v2121_v3 }
 0xe91   : > { %v3115_v5 = vpop.f32.mrf.mxu1  ;;  %3126 = vmatpush3.bf16.msra.mxu1 %v3323_v2  ;;  %v3330_v2 = vld [vmem:[%s4371_s11 + $0x8] sm:$0xff]  }
 0xe92   : > { %v2128_v6 = vadd.f32 %v2127_v4, %v4056_v46  ;;  %3139 = vmatprep.subr.bf16.mxu1 %v3678_v0 }
 0xe93   : > { %v2124_v7 = vpop.f32.mrf.mxu1 }
 0xe94   : > { %v2129_v8 = vsel %vm840_vm4, %v2128_v6, -inf }
 0xe95   : > { %2130 = vmax.xlane.f32.xlu1 %v2129_v8  ;;  %v3116_v9 = vpop.f32.mrf.mxu1 }
 0xf06   : > { %v1784_v10 = vpop.xlane.xlu1 %1783 }
 0xf07   : > { %v1785_v12 = vsub.f32 %v1781_v48, %v1784_v10 }
 0xf09   : > { %v1786_v13 = vmul.f32 1.442695, %v1785_v12 }
 0xf0b   : > { %3354 = vpow2.f32 %v1786_v13 }
 0xf0e   : > { %v1897_v14 = vpop.xlane.xlu0 %1896 }
 0xf0f   : > { %v1898_v15 = vsub.f32 %v1894_v55, %v1897_v14 }
 0xf11   : > { %v1899_v17 = vmul.f32 1.442695, %v1898_v15 }
 0xf13   : > { %3356 = vpow2.f32 %v1899_v17  ;;  %v2846_v17 = vld [vmem:[#allocation14 + $0x8] ss:$0 sm:$0xff] }
 0xf16   : > { %v2014_v18 = vpop.xlane.xlu0 %2013 }
 0xf17   : > { %v2015_v19 = vsub.f32 %v2011_v62, %v2014_v18 }
 0xf18   : > { %v3355_v20 = vpop.eup %3354 }
 0xf19   : > { %v2016_v21 = vmul.f32 1.442695, %v2015_v19  ;;  %v1788_v22 = vsel %vm840_vm4, %v3355_v20, 0.0 }
 0xf1a   : > { %1789 = vadd.xlane.f32.xlu0 %v1788_v22 }
 0xf1b   : > { %3358 = vpow2.f32 %v2016_v21 }
 0xf1e   : > { %v2131_v26 = vpop.xlane.xlu1 %2130 }
 0xf1f   : > { %v2132_v27 = vsub.f32 %v2128_v6, %v2131_v26 }
 0xf20   : > { %v3357_v46 = vpop.eup %3356 }
 0xf21   : > { %v1901_v23 = vsel %vm840_vm4, %v3357_v46, 0.0  ;;  %v2133_v29 = vmul.f32 1.442695, %v2132_v27 }
 0xf22   : > { %1902 = vadd.xlane.f32.xlu1 %v1901_v23 }
 0xf23   : > { %3360 = vpow2.f32 %v2133_v29 }
 0xf28   : > { %v3359_v24 = vpop.eup %3358 }
 0xf29   : > { %v2018_v25 = vsel %vm840_vm4, %v3359_v24, 0.0 }
 0xf2a   : > { %2019 = vadd.xlane.f32.xlu0 %v2018_v25 }
 0xf30   : > { %v3361_v30 = vpop.eup %3360 }
 0xf31   : > { %v2135_v31 = vsel %vm840_vm4, %v3361_v30, 0.0 }
 0xf33   : > { %1907 = vrot.lane.b32.xlu1 %v4171_v32, %s3687_s5 }
 0xf40   : > { %1794 = vrot.lane.b32.xlu0 %v4171_v32, %s3688_s25 }
 0xf44   : > { %2141 = vrot.lane.b32.xlu0 %v4171_v32, %s4430_s30 }
 0xf57   : > { %2136 = vadd.xlane.f32.xlu1 %v2135_v31  ;;  %v3325_v31 = vld [vmem:[#allocation11 + $0x10] sm:$0xff]  }
 0xf68   : > { %2024 = vrot.lane.b32.xlu1 %v4171_v32, %s4431_s29  ;;  %s4436_s29 = sld [smem:[#allocation33_spill]] }
 0xfa3   : > { %v1790_v33 = vpop.xlane.xlu0 %1789 }
 0xfa4   : > { %3362 = vrcp.f32 %v1790_v33  ;;  %v3327_v33 = vld [vmem:[%s4369_s9 + $0x30] sm:$0xff]  }
 0xfab   : > { %v1903_v11 = vpop.xlane.xlu1 %1902 }
 0xfac   : > { %3364 = vrcp.f32 %v1903_v11 }
 0xfaf   : > { %v1908_v39 = vpop.permute.xlu1 %1907 }
 0xfb0   : > { %v1913_v42 = vsel %vm906_vm6, %v1908_v39, 0  ;;  %v2851_v39 = vld [vmem:[#allocation14 + $0xb] ss:$0 sm:$0xff] }
 0xfb1   : > { %v3363_v34 = vpop.eup %3362 }
 0xfb2   : > { %v1792_v36 = vmul.f32 %v3363_v34, %v3355_v20 }
 0xfb3   : > { %v2020_v35 = vpop.xlane.xlu0 %2019 }
 0xfb4   : > { %v1793_v40 = vpack.c.bf16 %v1792_v36, %v1792_v36  ;;  %3366 = vrcp.f32 %v2020_v35 }
 0xfb7   : > { %v1795_v37 = vpop.permute.xlu0 %1794 }
 0xfb8   : > { %v1800_v38 = vsel %vm906_vm6, %v1795_v37, 0  ;;  %v2850_v37 = vld [vmem:[#allocation14 + $0xa] ss:$0 sm:$0xff] }
 0xfb9   : > { %3082 = vmatpush3.bf16.msra.mxu0 %v1800_v38  ;;  %v3365_v41 = vpop.eup %3364 }
 0xfba   : > { %3093 = vmatprep.subr.bf16.mxu0 %v3678_v0  ;;  %v1905_v32 = vmul.f32 %v3365_v41, %v3357_v46 }
 0xfbb   : > { %v2142_v49 = vpop.permute.xlu0 %2141 }
 0xfbc   : > { %3084 = vmatmul.mubr.msk.bf16.vlgmr.msra.gmra.mxu0 %vm840_vm4, %v1793_v40  ;;  %v1906_v43 = vpack.c.bf16 %v1905_v32, %v1905_v32  ;;  %v2147_v51 = vsel %vm906_vm6, %v2142_v49, 0  ;;  %v3328_v32 = vld [vmem:[%s4369_s9 + $0x28] sm:$0xff]  }
 0xfbd   : > { %3094 = vmatpush3.bf16.msra.mxu0 %v1913_v42  ;;  %3095 = vmatprep.mubr.msk.bf16.mxu0 %vm3679_vm0, %v3678_v0 }
 0xfbe   : > { %3105 = vmatprep.subr.bf16.mxu0 %v3678_v0 }
 0xfc1   : > { %v3367_v28 = vpop.eup %3366 }
 0xfc2   : > { %v2022_v45 = vmul.f32 %v3367_v28, %v3359_v24  ;;  %v2852_v28 = vld [vmem:[#allocation12 + $0x1] ss:$0 sm:$0xff] }
 0xfc4   : > { %3096 = vmatmul.mubr.msk.bf16.vlgmr.msra.gmra.mxu0 %vm840_vm4, %v1906_v43  ;;  %v2023_v50 = vpack.c.bf16 %v2022_v45, %v2022_v45  ;;  %v3329_v43 = vld [vmem:[%s4369_s9 + $0x20] sm:$0xff]  }
 0xfc5   : > { %3107 = vmatprep.mubr.msk.bf16.mxu0 %vm3679_vm0, %v3678_v0 }
 0xfe0   : > { %v2137_v44 = vpop.xlane.xlu1 %2136 }
 0xfe1   : > { %3368 = vrcp.f32 %v2137_v44 }
 0xfe4   : > { %v2025_v47 = vpop.permute.xlu1 %2024 }
 0xfe5   : > { %v2030_v48 = vsel %vm906_vm6, %v2025_v47, 0 }
 0xfe6   : > { %3106 = vmatpush3.bf16.msra.mxu0 %v2030_v48 }
 0xfe7   : > { %3117 = vmatprep.subr.bf16.mxu0 %v3678_v0 }
 0xfe9   : > { %3108 = vmatmul.mubr.msk.bf16.vlgmr.msra.gmra.mxu0 %vm840_vm4, %v2023_v50 }
 0xfea   : > { %3118 = vmatpush3.bf16.msra.mxu0 %v2147_v51  ;;  %3119 = vmatprep.mubr.msk.bf16.mxu0 %vm3679_vm0, %v3678_v0 }
 0xfeb   : > { %3131 = vmatprep.subr.bf16.mxu0 %v3678_v0 }
 0xfee   : > { %v3369_v52 = vpop.eup %3368 }
 0xfef   : > { %v2139_v53 = vmul.f32 %v3369_v52, %v3361_v30  ;;  %v3324_v30 = vld [vmem:[#allocation11 + $0x18] sm:$0xff]   ;;  %v2864_v52 = vld [vmem:[#allocation14 + $0x9] ss:$0 sm:$0xff] }
 0xff1   : > { %v2140_v54 = vpack.c.bf16 %v2139_v53, %v2139_v53 }
 0xff3   : > { %3120 = vmatmul.mubr.msk.bf16.vlgmr.msra.gmra.mxu0 %vm840_vm4, %v2140_v54 }
 0xff4   : > { %3135 = vmatprep.mubr.msk.bf16.mxu0 %vm3679_vm0, %v3678_v0  ;;  %3132 = vmatpush3.bf16.msra.mxu0 %v3324_v30 }
 0xff5   : > { %3133 = vmatprep.subr.bf16.mxu0 %v3678_v0 }
 0xff8   : > { %3134 = vmatpush3.bf16.msra.mxu0 %v3325_v31 }
 0xff9   : > { %3151 = vmatprep.subr.bf16.mxu0 %v3678_v0 }
0x107c   : > { %v1836_v55 = vpop.f32.mrf.mxu0 }
0x107d   : > { %1842 = vst.msk [vmem:[#allocation2] sm:$0xff] %vm840_vm4, %v1836_v55 }
0x107e   : > { %v3085_v56 = vpop.f32.mrf.mxu0 }
0x1080   : > { %v1839_v57 = vpop.f32.mrf.mxu0 }
0x1082   : > { %v3086_v58 = vpop.f32.mrf.mxu0 }
0x1084   : > { %v1949_v59 = vpop.f32.mrf.mxu0 }
0x1085   : > { %1956 = vrot.lane.b32.xlu1 %v1949_v59, %s3691_s28  ;;  %s2881_s28 = sshll.u32 %s3796_s24, 7  ;;  %s3584_s24 = scalar_lea.vmem %s4319_s22, 128 }
0x1086   : > { %v3097_v60 = vpop.f32.mrf.mxu0  ;;  %s4317_s14 = scalar_lea.hbm %s4436_s29, %s2881_s28  ;;  %p3585_p10 = scmp.ne.s32.totalorder %s4319_s22, %s3584_s24 }
0x1088   : > { %v1952_v61 = vpop.f32.mrf.mxu0  ;;  %p3586_p1 = pnand %p3585_p10, %p4437_p11 }
0x108a   : > { %v3098_v62 = vpop.f32.mrf.mxu0  ;;  %p3587_p3 = pneg %p3586_p1 }
0x10a9   : > { %v2066_v1 = vpop.f32.mrf.mxu0 }
0x10aa   : > { %2073 = vrot.lane.b32.xlu0 %v2066_v1, %s3692_s26  ;;  %s4434_s26 = sld [smem:[#allocation32_spill]] }
0x10ab   : > { %v3109_v3 = vpop.f32.mrf.mxu0 }
0x10ac   : > { %v3331_v3 = vld [vmem:[%s4371_s11] sm:$0xff]  }
0x10ad   : > { %v2069_v4 = vpop.f32.mrf.mxu0 }
0x10af   : > { %v3110_v5 = vpop.f32.mrf.mxu0 }
0x10b3   : > { %v2183_v6 = vpop.f32.mrf.mxu0 }
0x10b4   : > { %2190 = vrot.lane.b32.xlu1 %v2183_v6, %s4432_s2  ;;  %s4433_s2 = sld [smem:[#allocation30_spill]] }
0x10b5   : > { %v3121_v7 = vpop.f32.mrf.mxu0 }
0x10b7   : > { %v2186_v8 = vpop.f32.mrf.mxu0 }
0x10b8   : > { %v2870_v8 = vld [vmem:[#allocation14 + $0xc] ss:$0 sm:$0xff] }
0x10b9   : > { %v3122_v9 = vpop.f32.mrf.mxu0 }
0x10f7   : > { %v1957_v10 = vpop.permute.xlu1 %1956 }
0x10f8   : > { %1959 = vst.msk [vmem:[#allocation2] sm:$0xff] %vm1067_vm7, %v1957_v10  ;;  %v2871_v10 = vld [vmem:[#allocation14 + $0xd] ss:$0 sm:$0xff] }
0x111c   : > { %v2074_v12 = vpop.permute.xlu0 %2073 }
0x111d   : > { %2076 = vst.msk [vmem:[#allocation2] sm:$0xff] %vm1185_vm8, %v2074_v12 }
0x1126   : > { %v2191_v13 = vpop.permute.xlu1 %2190 }
0x1127   : > { %2193 = vst.msk [vmem:[#allocation2] sm:$0xff] %vm1303_vm9, %v2191_v13 }
0x112e   : > { %v2194_v14 = vld [vmem:[#allocation2] sm:$0xff] }
0x112f   : > { %v2195_v15 = vpack.c.bf16 %v2194_v14, %v2194_v14 }
0x1131   : > { %3128 = vmatmul.mubr.msk.bf16.vlgmr.msra.gmra.mxu1 %vm725_vm3, %v2195_v15  ;;  %v3332_v15 = vld [vmem:[#allocation15 + $0x8] sm:$0xff]  }
0x1132   : > { %3147 = vmatprep.mubr.msk.bf16.mxu1 %vm3679_vm0, %v3678_v0 }
0x11f1   : > { %v2256_v18 = vpop.f32.mrf.mxu1 }
0x11f2   : > { %v2257_v19 = vadd.f32 %v2846_v17, %v2256_v18  ;;  %v3333_v17 = vld [vmem:[#allocation15] sm:$0xff]  }
0x11f3   : > { %v3129_v20 = vpop.f32.mrf.mxu1  ;;  %v2872_v18 = vld [vmem:[%s4433_s2] ss:$0 sm:$0xff]  ;;  %s3590_s2 = scalar_lea.vmem %s3589_s13, 256 }
0x11f4   : > { %v2262_v21 = vadd.f32 %v2257_v19, %v4153_v16  ;;  %v3326_v16 = vld [vmem:[%s4369_s9 + $0x38] sm:$0xff]   ;;  %p3592_p6 = scmp.lt.s32.totalorder %s3590_s2, %s3584_s24 }
0x11f5   : > { %v2259_v22 = vpop.f32.mrf.mxu1  ;;  %3140 = vmatpush3.bf16.msra.mxu1 %v3326_v16 }
0x11f6   : > { %v2263_v46 = vsel %vm725_vm3, %v2262_v21, 0.0  ;;  %3141 = vmatprep.subr.bf16.mxu1 %v3678_v0  ;;  %p3593_p9 = por %p3592_p6, %p3591_p4 }
0x11f7   : > { %2264 = vadd.xlane.f32.xlu0 %v2263_v46  ;;  %v3130_v23 = vpop.f32.mrf.mxu1 }
0x11f8   : > { %p3594_p12 = pnand %p3593_p9, %p3587_p3 }
0x11f9   : > { %3142 = vmatpush3.bf16.msra.mxu1 %v3327_v33 }
0x11fa   : > { %3143 = vmatprep.subr.bf16.mxu1 %v3678_v0 }
0x11fd   : > { %3144 = vmatpush3.bf16.msra.mxu1 %v3328_v32 }
0x11fe   : > { %3145 = vmatprep.subr.bf16.mxu1 %v3678_v0 }
0x1201   : > { %3146 = vmatpush3.bf16.msra.mxu1 %v3329_v43 }
0x1280   : > { %v2265_v24 = vpop.xlane.xlu0 %2264 }
0x1281   : > { %v2266_v25 = vmul.f32 0.03125, %v2265_v24 }
0x1283   : > { %v2267_v26 = vsub.f32 %v2262_v21, %v2266_v25 }
0x1285   : > { %v2268_v27 = vmul.f32 %v2267_v26, %v2267_v26 }
0x1287   : > { %v2269_v29 = vsel %vm725_vm3, %v2268_v27, 0.0 }
0x1288   : > { %2270 = vadd.xlane.f32.xlu1 %v2269_v29 }
0x1311   : > { %v2271_v11 = vpop.xlane.xlu1 %2270 }
0x1312   : > { %v2272_v34 = vmul.f32 0.03125, %v2271_v11 }
0x1314   : > { %v2273_v35 = vadd.f32 1e-05, %v2272_v34 }
0x1316   : > { %3370 = vrsqrt.f32 %v2273_v35 }
0x1323   : > { %v3371_v36 = vpop.eup %3370 }
0x1324   : > { %v2275_v38 = vmul.f32 %v3371_v36, %v2267_v26 }
0x1326   : > { %v2282_v40 = vmul.f32 %v2850_v37, %v2275_v38 }
0x1328   : > { %v2289_v41 = vadd.f32 %v2851_v39, %v2282_v40 }
0x132a   : > { %v2290_v42 = vpack.c.bf16 %v2289_v41, %v2289_v41 }
0x132c   : > { %3136 = vmatmul.mubr.msk.bf16.vlgmr.msra.gmra.mxu0 %vm725_vm3, %v2290_v42 }
0x132d   : > { %3155 = vmatprep.mubr.msk.bf16.mxu0 %vm3679_vm0, %v3678_v0  ;;  %3152 = vmatpush3.bf16.msra.mxu0 %v3330_v2 }
0x132e   : > { %3153 = vmatprep.subr.bf16.mxu0 %v3678_v0 }
0x1331   : > { %3154 = vmatpush3.bf16.msra.mxu0 %v3331_v3 }
0x1332   : > { %3159 = vmatprep.subr.bf16.mxu0 %v3678_v0 }
0x13ec   : > { %v2353_v44 = vpop.f32.mrf.mxu0 }
0x13ed   : > { %v2354_v45 = vadd.f32 %v2852_v28, %v2353_v44 }
0x13ee   : > { %v3137_v47 = vpop.f32.mrf.mxu0 }
0x13ef   : > { %v2359_v48 = vmax.f32 %v2354_v45, 0.0 }
0x13f0   : > { %v2356_v49 = vpop.f32.mrf.mxu0 }
0x13f1   : > { %v2360_v50 = vpack.c.bf16 %v2359_v48, %v2359_v48 }
0x13f2   : > { %v3138_v51 = vpop.f32.mrf.mxu0 }
0x13f3   : > { %3148 = vmatmul.mubr.msk.bf16.vlgmr.msra.gmra.mxu1 %vm1508_vm10, %v2360_v50 }
0x14b3   : > { %v2437_v53 = vpop.f32.mrf.mxu1 }
0x14b4   : > { %v2438_v54 = vadd.f32 %v2864_v52, %v2437_v53 }
0x14b5   : > { %v3149_v55 = vpop.f32.mrf.mxu1 }
0x14b6   : > { %v2443_v56 = vadd.f32 %v2438_v54, %v2289_v41 }
0x14b7   : > { %v2440_v57 = vpop.f32.mrf.mxu1 }
0x14b8   : > { %v2444_v58 = vsel %vm725_vm3, %v2443_v56, 0.0 }
0x14b9   : > { %2445 = vadd.xlane.f32.xlu0 %v2444_v58  ;;  %v3150_v59 = vpop.f32.mrf.mxu1 }
0x1542   : > { %v2446_v60 = vpop.xlane.xlu0 %2445 }
0x1543   : > { %v2447_v61 = vmul.f32 0.03125, %v2446_v60 }
0x1545   : > { %v2448_v62 = vsub.f32 %v2443_v56, %v2447_v61 }
0x1547   : > { %v2449_v63 = vmul.f32 %v2448_v62, %v2448_v62 }
0x1549   : > { %v2450_v1 = vsel %vm725_vm3, %v2449_v63, 0.0 }
0x154a   : > { %2451 = vadd.xlane.f32.xlu0 %v2450_v1 }
0x15d3   : > { %v2452_v4 = vpop.xlane.xlu0 %2451 }
0x15d4   : > { %v2453_v5 = vmul.f32 0.03125, %v2452_v4 }
0x15d6   : > { %v2454_v6 = vadd.f32 1e-05, %v2453_v5 }
0x15d8   : > { %3372 = vrsqrt.f32 %v2454_v6 }
0x15e5   : > { %v3373_v7 = vpop.eup %3372 }
0x15e6   : > { %v2456_v9 = vmul.f32 %v3373_v7, %v2448_v62 }
0x15e8   : > { %v2463_v12 = vmul.f32 %v2870_v8, %v2456_v9 }
0x15ea   : > { %v2470_v13 = vadd.f32 %v2871_v10, %v2463_v12 }
0x15ec   : > { %v2471_v14 = vpack.c.bf16 %v2470_v13, %v2470_v13 }
0x15ee   : > { %3156 = vmatmul.mubr.msk.bf16.vlgmr.msra.gmra.mxu0 %vm725_vm3, %v2471_v14 }
0x15ef   : > { %3163 = vmatprep.mubr.msk.bf16.mxu0 %vm3679_vm0, %v3678_v0  ;;  %3160 = vmatpush3.bf16.msra.mxu0 %v3332_v15 }
0x15f0   : > { %3161 = vmatprep.subr.bf16.mxu0 %v3678_v0  ;;  %v2876_v0 = vld [vmem:[%s4434_s26] ss:$0 sm:$0xff] }
0x15f3   : > { %3162 = vmatpush3.bf16.msra.mxu0 %v3333_v17 }
0x16ae   : > { %v2532_v19 = vpop.f32.mrf.mxu0 }
0x16af   : > { %v2533_v20 = vadd.f32 %v2872_v18, %v2532_v19 }
0x16b0   : > { %v3157_v21 = vpop.f32.mrf.mxu0 }
0x16b1   : > { %v2538_v22 = vmax.f32 %v2533_v20, 0.0 }
0x16b2   : > { %v2535_v46 = vpop.f32.mrf.mxu0 }
0x16b3   : > { %v2539_v23 = vpack.c.bf16 %v2538_v22, %v2538_v22 }
0x16b4   : > { %v3158_v24 = vpop.f32.mrf.mxu0 }
0x16b5   : > { %3164 = vmatmul.mubr.msk.bf16.vlgmr.msra.gmra.mxu0 %vm725_vm3, %v2539_v23 }
0x1775   : > { %v2600_v25 = vpop.f32.mrf.mxu0 }
0x1776   : > { %v2601_v26 = vadd.f32 %v2876_v0, %v2600_v25 }
0x1777   : > { %v3165_v27 = vpop.f32.mrf.mxu0 }
0x1778   : > { %2606 = vst [vmem:[%s609_s8] sm:$0xff] %v2601_v26 }
0x1779   : > { %v2603_v29 = vpop.f32.mrf.mxu0 }
0x177a   : > { %3597 = shalt.err (!%p3594_p12)
}
0x177b   : > { %s3598_s5 = scalar_lea.hbm %s4317_s14, 128  ;;  %s3602_s26 = scalar_lea.hbm %s4436_s29, 256 }
0x177c   : > { %p3599_p13 = scmp.ne.s32.totalorder %s4317_s14, %s3598_s5  ;;  %p3603_p2 = scmp.lt.s32.totalorder %s4317_s14, %s4436_s29 }
0x177d   : > { %p3604_p5 = scmp.lt.s32.totalorder %s3602_s26, %s3598_s5 }
0x177e   : > { %p3600_p7 = pnand %p3599_p13, %p4437_p11 }
0x177f   : > { %p3605_p8 = por %p3604_p5, %p3603_p2 }
0x1780   : > { %p3601_p0 = pneg %p3600_p7 }
0x1782   : > { %p3606_p10 = pnand %p3605_p8, %p3601_p0 }
0x1784   : > { %3609 = shalt.err (!%p3606_p10)
}
0x1785   : > { %3197 = dma.vmem_to_hbm [thread:$0]  (%p4437_p11), %s4319_s22, 128, %s4317_s14, %s2608_s1   ;;  %v3166_v30 = vpop.f32.mrf.mxu0 }
0x1786 PF: > { %s2633_s8 = sand.u32 1, %s3652_s18   ;;  %p4438_p1 = scmp.ne.s32.totalorder %s4418_s27, 0 }
0x1787   : > { %p4439_p3 = scmp.ge.s32.totalorder %s3664_s21, 2  ;;  %s2634_s12 = scalar_lea.sflag [#allocation5], %s2633_s8 }
0x1789   : > { %p3226_p4 = pnand %p4439_p3, %p4438_p1 }
0x178b   : > { %p3227_p6 = pneg %p3226_p4 }
0x178d   : > { %3647 = dma.done.wait (%p3227_p6), %s2634_s12, 128  }
0x178e   : > { %3649 = vsyncadd (%p3227_p6), %s2634_s12, 4294967168  ;;  %p32_p9 = scmp.ge.s32.totalorder %s3899_s16, 4   ;;  %s4440_s18 = smov %s3656_s19 }
0x178f   : > { %s4441_s19 = smov %s3660_s20  ;;  %s4442_s20 = smov %s3911_s23 }
0x1790   : > { %s4443_s21 = smov %s3899_s16  ;;  %34 = sbr.rel (!%p32_p9) target bundleno = 20 (0x14), region = 173 }
0x1795   :  { %2639 = vsyncpa [#allocation4], 1 }
0x1796   :  { %2641 = vsyncpa [#allocation4 + $0x1], 1 }
0x1797   :  { %2642 = vsyncpa [#allocation7], 1 }
0x1798   :  { %2643 = vsyncpa [#allocation10], 1 }
0x1799   :  { %2644 = vsyncpa [#allocation13], 1 }
0x179a   :  { %2645 = vsyncpa [#allocation16], 1 }
0x179b   :  { %2646 = vsyncpa [#allocation5], 1 }
0x179c   :  { %2648 = vsyncpa [#allocation5 + $0x1], 1 }

</bundles_post_ra>
